<compile_context>
chip_gen: v6e
topology: v6e:2x2x1
jax: 0.10.0
libtpu: 0.0.40
codegen_flags: <defaults>
</compile_context>

<pallas_src>
import numpy as np
import jax
import jax.numpy as jnp
from jax.experimental import pallas as pl
from jax.experimental.pallas import tpu as pltpu


def _round_up(a, b):
    return (a + b - 1) // b * b


def _cdiv(a, b):
    return (a + b - 1) // b


# ----------------------------------------------------------------------------
# Kernel
# ----------------------------------------------------------------------------
def aux_head_kernel(x_ref, m1_ref, b1_ref, w2_ref, b2_ref, wl_ref, bl_ref,
                    out_ref, acc_ref):
    k = pl.program_id(1)

    @pl.when(k == 0)
    def _():
        acc_ref[...] = jnp.zeros_like(acc_ref)

    # Input ReLU on this (B, K_tile) bf16 chunk (zero K-padding is unaffected),
    # then the fused AvgPool(5) + 1x1-conv(C->128) + BN1-scale partial matmul:
    # columns are tap-major (p*128 + j), rows are channel-major (c*HW + hw).
    x = jnp.maximum(x_ref[...], 0)
    acc_ref[...] += jnp.dot(x, m1_ref[...], preferred_element_type=jnp.float32)

    @pl.when(k == pl.num_programs(1) - 1)
    def _():
        # BN1 bias + ReLU.
        h1 = jnp.maximum(acc_ref[...] + b1_ref[...], 0.0)             # (B, 512)

        # Fused 2x2-conv(128->768) + BN2-scale: the 4 pooled taps are
        # concatenated on K in the same tap-major order as h1's columns.
        h2 = jnp.dot(h1.astype(jnp.bfloat16), w2_ref[...],
                     preferred_element_type=jnp.float32)
        h2 = jnp.maximum(h2 + b2_ref[...], 0.0)                       # (B, 768)

        # Linear(768, n_classes), lane-padded to a multiple of 128.
        logits = jnp.dot(h2.astype(jnp.bfloat16), wl_ref[...],
                         preferred_element_type=jnp.float32)
        out_ref[...] = logits + bl_ref[...]                           # (B, NC_PAD)


# ----------------------------------------------------------------------------
# One-time parameter folding / fusion (run once per checkpoint, NOT per step)
# ----------------------------------------------------------------------------
def make_pooling_matrix(input_size):
    """(4, H*W) matrix implementing AvgPool2d(5, stride=input_size-5)."""
    stride = input_size - 5
    H = W = input_size
    Pt = np.zeros((4, H * W), np.float32)
    for ph in range(2):
        for pw in range(2):
            p = ph * 2 + pw
            for dh in range(5):
                for dw in range(5):
                    Pt[p, (ph * stride + dh) * W + (pw * stride + dw)] = 1.0 / 25.0
    return jnp.asarray(Pt)


def prepare_aux_head_params(params, input_size):
    """Fold BN stats and fuse operators into the three matmul operands.

    Hoisted out of the forward: building and bf16-casting these weight slabs is
    a weight-sized HBM round trip that must not be paid per inference step.
    """
    (W1, g1, be1, m1, v1, W2, g2, be2, m2, v2, Wl, bl) = params
    C = W1.shape[1]
    n_classes = Wl.shape[0]
    eps = 1e-5
    HW = input_size * input_size

    s1 = g1 / jnp.sqrt(v1 + eps)
    b1 = be1 - m1 * s1
    s2 = g2 / jnp.sqrt(v2 + eps)
    b2 = be2 - m2 * s2

    Pt = make_pooling_matrix(input_size)                            # (4, HW)

    # Fused pool + 1x1 conv + BN1-scale, CHANNEL-MAJOR rows:
    #   M1[c*HW + q, p*128 + j] = Pt[p, q] * W1[j, c] * s1[j]
    # so the kernel input is the free reshape x_nchw.reshape(N, C*HW)
    # (no NCHW->NHWC transpose of the activations).
    #
    # NOTE: fusing the 5x5 pool into M1 inflates matmul-1 FLOPs/weight bytes by
    # ~HW/4 vs an unfused pool.  The K-streaming grid keeps this VMEM-safe for
    # any C; at DARTS aux-head sizes (C up to a few hundred) the kernel stays
    # x-DMA bound, so the simpler fused form is kept.  For very large C an
    # in-kernel VPU pool + (4B, C) @ (C, 128) matmul would cut MXU work further.
    K1 = C * HW
    M1 = jnp.einsum('pq,jk,j->kqpj', Pt, W1, s1).reshape(K1, 4 * 128)
    b1t = jnp.tile(b1, 4).reshape(1, 4 * 128)

    # Fused 2x2 conv + BN2-scale: W2f[(kh*2+kw)*128 + j, o] = W2[o,j,kh,kw]*s2[o]
    # (tap ordering matches M1's p = ph*2 + pw).
    W2f = jnp.einsum('ojhw,o->hwjo', W2, s2).reshape(4 * 128, 768)
    b2r = b2.reshape(1, 768)

    # Classifier, lane-padded to a multiple of 128 (unmasked stores).
    NC_PAD = _round_up(max(n_classes, 128), 128)
    Wlp = jnp.zeros((768, NC_PAD), jnp.float32).at[:, :n_classes].set(Wl.T)
    blp = jnp.zeros((1, NC_PAD), jnp.float32).at[:, :n_classes].set(bl)

    # K-reduction tiling for matmul-1: cap the per-step K chunk so the streamed
    # x / M1 tiles stay small (v7x has only 64 MiB VMEM).
    K_TILE_MAX = 2048
    if K1 <= K_TILE_MAX:
        K_pad = _round_up(K1, 128)
        K_tile = K_pad
    else:
        K_tile = K_TILE_MAX
        K_pad = _round_up(K1, K_TILE_MAX)

    M1b = jnp.pad(M1, ((0, K_pad - K1), (0, 0))).astype(jnp.bfloat16)

    return dict(M1=M1b, b1=b1t,
                W2=W2f.astype(jnp.bfloat16), b2=b2r,
                Wl=Wlp.astype(jnp.bfloat16), bl=blp,
                K1=K1, K_pad=K_pad, K_tile=K_tile,
                C=C, n_classes=n_classes, NC_PAD=NC_PAD)


# ----------------------------------------------------------------------------
# Forward
# ----------------------------------------------------------------------------
def auxiliary_head_forward(x_nchw, prepared, input_size):
    N, C, H, W = x_nchw.shape
    assert H == W == input_size and C == prepared["C"]

    K1, K_pad, K_tile = prepared["K1"], prepared["K_pad"], prepared["K_tile"]
    n_classes = prepared["n_classes"]
    NC_PAD = prepared["NC_PAD"]

    # Free, contiguous reshape of NCHW (no transpose); pad + bf16 cast only.
    xr = x_nchw.reshape(N, K1)

    # Batch tiling: aim for ~256 rows/step (MXU-saturating on v6e/v7x), keep
    # >= 2 balanced tiles once N >= 32 so both v7x TensorCores get work, and
    # avoid padding N up to a full oversized tile for awkward N.
    # (On v5e a 128-row tile already saturates its 128-wide MXU; 256 is still
    # fine there since the x tile stays well under the raised VMEM limit.)
    num_tiles = max(1, _cdiv(N, 256))
    if N >= 32:
        num_tiles = max(num_tiles, 2)
    B_tile = _round_up(_cdiv(N, num_tiles), 16)
    N_pad = num_tiles * B_tile

    xr = jnp.pad(xr, ((0, N_pad - N), (0, K_pad - K1))).astype(jnp.bfloat16)

    grid = (num_tiles, K_pad // K_tile)

    # Explicit scoped-VMEM budget with headroom (defaults are only 16/32 MiB),
    # capped at 64 MiB so it never exceeds v7x's physical VMEM.
    # Resident (constant index_map) operands + streamed tiles, x2 for the
    # default double buffering.
    resident = (prepared["M1"].shape[0] and 0)  # M1 is streamed, not resident
    resident = (prepared["W2"].size * 2 + prepared["Wl"].size * 2
                + (prepared["b1"].size + prepared["b2"].size
                   + prepared["bl"].size) * 4)
    streamed = B_tile * K_tile * 2 + K_tile * 512 * 2 + B_tile * NC_PAD * 4
    scratch = B_tile * 512 * 4
    needed = 2 * (resident + streamed) + scratch
    vmem_limit = int(min(max(2 * needed, 32 << 20), 64 << 20))

    flops = 2 * N_pad * (K_pad * 512 + 512 * 768 + 768 * NC_PAD)
    bytes_accessed = (N_pad * K_pad * 2            # x (bf16)
                      + K_pad * 512 * 2            # fused pool/conv1 weight
                      + 512 * 768 * 2              # fused conv2 weight
                      + 768 * NC_PAD * 2           # classifier weight
                      + N_pad * NC_PAD * 4)        # logits
    cost = pl.CostEstimate(flops=flops, transcendentals=0,
                           bytes_accessed=bytes_accessed)

    out = pl.pallas_call(
        aux_head_kernel,
        out_shape=jax.ShapeDtypeStruct((N_pad, NC_PAD), jnp.float32),
        grid_spec=pltpu.PrefetchScalarGridSpec(
            num_scalar_prefetch=0,
            grid=grid,                                               # (batch, K)
            in_specs=[
                pl.BlockSpec((B_tile, K_tile), lambda n, k: (n, k)),  # x (bf16)
                pl.BlockSpec((K_tile, 512), lambda n, k: (k, 0)),     # fused pool+conv1+s1
                pl.BlockSpec((1, 512), lambda n, k: (0, 0)),          # bn1 bias (tiled x4)
                pl.BlockSpec((512, 768), lambda n, k: (0, 0)),        # fused conv2+s2
                pl.BlockSpec((1, 768), lambda n, k: (0, 0)),          # bn2 bias
                pl.BlockSpec((768, NC_PAD), lambda n, k: (0, 0)),     # Wl^T (padded)
                pl.BlockSpec((1, NC_PAD), lambda n, k: (0, 0)),       # bl (padded)
            ],
            out_specs=pl.BlockSpec((B_tile, NC_PAD), lambda n, k: (n, 0)),
            scratch_shapes=[pltpu.VMEM((B_tile, 512), jnp.float32)],  # matmul-1 acc
        ),
        compiler_params=pltpu.CompilerParams(
            dimension_semantics=("parallel", "arbitrary"),
            vmem_limit_bytes=vmem_limit),
        cost_estimate=cost,
    )(xr, prepared["M1"], prepared["b1"], prepared["W2"], prepared["b2"],
      prepared["Wl"], prepared["bl"])

    return out[:N, :n_classes]


# ----------------------------------------------------------------------------
# Pure-JAX reference (f32, NCHW), mirroring the PyTorch module with BN folded
# ----------------------------------------------------------------------------
def reference_forward(x, W1, s1, b1, W2, s2, b2, Wl, bl, input_size):
    HIGH = jax.lax.Precision.HIGHEST
    stride = input_size - 5
    y = jnp.maximum(x, 0.0)
    rows = []
    for ph in range(2):
        cols = []
        for pw in range(2):
            win = y[:, :, ph * stride:ph * stride + 5, pw * stride:pw * stride + 5]
            cols.append(jnp.mean(win, axis=(2, 3)))
        rows.append(jnp.stack(cols, axis=-1))
    pooled = jnp.stack(rows, axis=-2)                              # (N, C, 2, 2)
    h = jnp.einsum('nchw,kc->nkhw', pooled, W1, precision=HIGH)
    h = jnp.maximum(h * s1[None, :, None, None] + b1[None, :, None, None], 0.0)
    o = jnp.einsum('nkhw,jkhw->nj', h, W2, precision=HIGH)
    o = jnp.maximum(o * s2[None, :] + b2[None, :], 0.0)
    return jnp.einsum('nk,jk->nj', o, Wl, precision=HIGH) + bl[None, :]


if __name__ == "__main__":
    N, C, input_size, n_classes = 2, 4, 8, 10
    key = jax.random.PRNGKey(0)
    ks = jax.random.split(key, 13)

    x = jax.random.normal(ks[0], (N, C, input_size, input_size), jnp.float32)

    # Deterministic synthetic parameters (shapes from the module's __init__).
    W1 = 0.10 * jax.random.normal(ks[1], (128, C), jnp.float32)          # Conv2d(C,128,1)
    g1 = 1.0 + 0.1 * jax.random.normal(ks[2], (128,), jnp.float32)       # BN(128) gamma
    be1 = 0.1 * jax.random.normal(ks[3], (128,), jnp.float32)            # BN(128) beta
    m1 = 0.1 * jax.random.normal(ks[4], (128,), jnp.float32)             # BN(128) running_mean
    v1 = jnp.abs(jax.random.normal(ks[5], (128,), jnp.float32)) + 0.5    # BN(128) running_var
    W2 = 0.05 * jax.random.normal(ks[6], (768, 128, 2, 2), jnp.float32)  # Conv2d(128,768,2)
    g2 = 1.0 + 0.1 * jax.random.normal(ks[7], (768,), jnp.float32)
    be2 = 0.1 * jax.random.normal(ks[8], (768,), jnp.float32)
    m2 = 0.1 * jax.random.normal(ks[9], (768,), jnp.float32)
    v2 = jnp.abs(jax.random.normal(ks[10], (768,), jnp.float32)) + 0.5
    Wl = 0.05 * jax.random.normal(ks[11], (n_classes, 768), jnp.float32)  # Linear(768,nc)
    bl = 0.1 * jax.random.normal(ks[12], (n_classes,), jnp.float32)

    params = (W1, g1, be1, m1, v1, W2, g2, be2, m2, v2, Wl, bl)

    # One-time weight folding (per checkpoint), then the per-step forward.
    prepared = prepare_aux_head_params(params, input_size)
    logits = auxiliary_head_forward(x, prepared, input_size)
    logits = jax.block_until_ready(logits)
    assert logits.shape == (N, n_classes)

    # Cross-check against a plain-JAX f32 NCHW reference (BN folded the same
    # way).  Tolerance accounts for bf16 matmul operands / f32 accumulation.
    eps = 1e-5
    s1 = g1 / jnp.sqrt(v1 + eps)
    b1 = be1 - m1 * s1
    s2 = g2 / jnp.sqrt(v2 + eps)
    b2 = be2 - m2 * s2
    ref = reference_forward(x, W1, s1, b1, W2, s2, b2, Wl, bl, input_size)
    np.testing.assert_allclose(np.asarray(logits), np.asarray(ref),
                               rtol=2e-2, atol=2e-2)

    print("KERNEL_OK")
</pallas_src>

<mosaic_0001>
module attributes {stable_mosaic.version = 11 : i64} {
  func.func @aux_head_kernel(%arg0: i32, %arg1: i32, %arg2: memref<16x256xbf16, #tpu.memory_space<vmem>>, %arg3: memref<256x512xbf16, #tpu.memory_space<vmem>>, %arg4: memref<1x512xf32, #tpu.memory_space<vmem>>, %arg5: memref<512x768xbf16, #tpu.memory_space<vmem>>, %arg6: memref<1x768xf32, #tpu.memory_space<vmem>>, %arg7: memref<768x128xbf16, #tpu.memory_space<vmem>>, %arg8: memref<1x128xf32, #tpu.memory_space<vmem>>, %arg9: memref<16x128xf32, #tpu.memory_space<vmem>>, %arg10: memref<16x512xf32, #tpu.memory_space<vmem>>) attributes {dimension_semantics = [#tpu.dimension_semantics<parallel>, #tpu.dimension_semantics<arbitrary>], iteration_bounds = array<i64: 1, 1>, scalar_prefetch = 0 : i64, scratch_operands = 1 : i64, tpu.core_type = #tpu.core_type<tc>, window_params = [{transform_indices = @transform_0, window_bounds = array<i64: 16, 256>}, {transform_indices = @transform_1, window_bounds = array<i64: 256, 512>}, {pipeline_mode = #tpu.pipeline_mode<synchronous>, transform_indices = @transform_2, window_bounds = array<i64: 1, 512>}, {pipeline_mode = #tpu.pipeline_mode<synchronous>, transform_indices = @transform_3, window_bounds = array<i64: 512, 768>}, {pipeline_mode = #tpu.pipeline_mode<synchronous>, transform_indices = @transform_4, window_bounds = array<i64: 1, 768>}, {pipeline_mode = #tpu.pipeline_mode<synchronous>, transform_indices = @transform_5, window_bounds = array<i64: 768, 128>}, {pipeline_mode = #tpu.pipeline_mode<synchronous>, transform_indices = @transform_6, window_bounds = array<i64: 1, 128>}, {transform_indices = @transform_7, window_bounds = array<i64: 16, 128>}]} {
    %c0_i32 = arith.constant 0 : i32
    %0 = arith.cmpi eq, %arg1, %c0_i32 : i32
    %1 = arith.extui %0 : i1 to i32
    %c0_i32_0 = arith.constant 0 : i32
    %2 = arith.cmpi ne, %1, %c0_i32_0 : i32
    scf.if %2 {
      %cst_11 = arith.constant 0.000000e+00 : f32
      %14 = vector.broadcast %cst_11 : f32 to vector<16x512xf32>
      %c0_12 = arith.constant 0 : index
      %c0_13 = arith.constant 0 : index
      %15 = vector.load %arg10[%c0_12, %c0_13] : memref<16x512xf32, #tpu.memory_space<vmem>>, vector<16x512xf32>
      tpu.vector_store %arg10[%c0_12, %c0_13], %14 {strides = array<i32>} : memref<16x512xf32, #tpu.memory_space<vmem>>, vector<16x512xf32>,
    } else {
    }
    %c0 = arith.constant 0 : index
    %c0_1 = arith.constant 0 : index
    %3 = vector.load %arg2[%c0, %c0_1] : memref<16x256xbf16, #tpu.memory_space<vmem>>, vector<16x256xbf16>
    %cst = arith.constant 0.000000e+00 : bf16
    %4 = vector.broadcast %cst : bf16 to vector<16x256xbf16>
    %5 = arith.maximumf %3, %4 : vector<16x256xbf16>
    %c0_2 = arith.constant 0 : index
    %c0_3 = arith.constant 0 : index
    %6 = vector.load %arg10[%c0_2, %c0_3] : memref<16x512xf32, #tpu.memory_space<vmem>>, vector<16x512xf32>
    %c0_4 = arith.constant 0 : index
    %c0_5 = arith.constant 0 : index
    %7 = vector.load %arg3[%c0_4, %c0_5] : memref<256x512xbf16, #tpu.memory_space<vmem>>, vector<256x512xbf16>
    %cst_6 = arith.constant dense<0.000000e+00> : vector<16x512xf32>
    %8 = tpu.matmul %5, %7, %cst_6 {dimension_numbers = #tpu.dot_dimension_numbers<[1], [0], [0], [1], [0, 0, 1, 1], [], []>} : vector<16x256xbf16>, vector<256x512xbf16>, vector<16x512xf32> -> vector<16x512xf32>
    %9 = arith.addf %6, %8 : vector<16x512xf32>
    %c0_7 = arith.constant 0 : index
    %c0_8 = arith.constant 0 : index
    %10 = vector.load %arg10[%c0_7, %c0_8] : memref<16x512xf32, #tpu.memory_space<vmem>>, vector<16x512xf32>
    tpu.vector_store %arg10[%c0_7, %c0_8], %9 {strides = array<i32>} : memref<16x512xf32, #tpu.memory_space<vmem>>, vector<16x512xf32>,
    %c0_i32_9 = arith.constant 0 : i32
    %11 = arith.cmpi eq, %arg1, %c0_i32_9 : i32
    %12 = arith.extui %11 : i1 to i32
    %c0_i32_10 = arith.constant 0 : i32
    %13 = arith.cmpi ne, %12, %c0_i32_10 : i32
    scf.if %13 {
      %c0_11 = arith.constant 0 : index
      %c0_12 = arith.constant 0 : index
      %14 = vector.load %arg10[%c0_11, %c0_12] : memref<16x512xf32, #tpu.memory_space<vmem>>, vector<16x512xf32>
      %c0_13 = arith.constant 0 : index
      %c0_14 = arith.constant 0 : index
      %15 = vector.load %arg4[%c0_13, %c0_14] : memref<1x512xf32, #tpu.memory_space<vmem>>, vector<1x512xf32>
      %16 = vector.broadcast %15 : vector<1x512xf32> to vector<16x512xf32>
      %17 = arith.addf %14, %16 : vector<16x512xf32>
      %cst_15 = arith.constant 0.000000e+00 : f32
      %18 = vector.broadcast %cst_15 : f32 to vector<16x512xf32>
      %19 = arith.maximumf %17, %18 : vector<16x512xf32>
      %20 = arith.truncf %19 : vector<16x512xf32> to vector<16x512xbf16>
      %c0_16 = arith.constant 0 : index
      %c0_17 = arith.constant 0 : index
      %21 = vector.load %arg5[%c0_16, %c0_17] : memref<512x768xbf16, #tpu.memory_space<vmem>>, vector<512x768xbf16>
      %cst_18 = arith.constant dense<0.000000e+00> : vector<16x768xf32>
      %22 = tpu.matmul %20, %21, %cst_18 {dimension_numbers = #tpu.dot_dimension_numbers<[1], [0], [0], [1], [0, 0, 1, 1], [], []>} : vector<16x512xbf16>, vector<512x768xbf16>, vector<16x768xf32> -> vector<16x768xf32>
      %c0_19 = arith.constant 0 : index
      %c0_20 = arith.constant 0 : index
      %23 = vector.load %arg6[%c0_19, %c0_20] : memref<1x768xf32, #tpu.memory_space<vmem>>, vector<1x768xf32>
      %24 = vector.broadcast %23 : vector<1x768xf32> to vector<16x768xf32>
      %25 = arith.addf %22, %24 : vector<16x768xf32>
      %cst_21 = arith.constant 0.000000e+00 : f32
      %26 = vector.broadcast %cst_21 : f32 to vector<16x768xf32>
      %27 = arith.maximumf %25, %26 : vector<16x768xf32>
      %28 = arith.truncf %27 : vector<16x768xf32> to vector<16x768xbf16>
      %c0_22 = arith.constant 0 : index
      %c0_23 = arith.constant 0 : index
      %29 = vector.load %arg7[%c0_22, %c0_23] : memref<768x128xbf16, #tpu.memory_space<vmem>>, vector<768x128xbf16>
      %cst_24 = arith.constant dense<0.000000e+00> : vector<16x128xf32>
      %30 = tpu.matmul %28, %29, %cst_24 {dimension_numbers = #tpu.dot_dimension_numbers<[1], [0], [0], [1], [0, 0, 1, 1], [], []>} : vector<16x768xbf16>, vector<768x128xbf16>, vector<16x128xf32> -> vector<16x128xf32>
      %c0_25 = arith.constant 0 : index
      %c0_26 = arith.constant 0 : index
      %31 = vector.load %arg8[%c0_25, %c0_26] : memref<1x128xf32, #tpu.memory_space<vmem>>, vector<1x128xf32>
      %32 = vector.broadcast %31 : vector<1x128xf32> to vector<16x128xf32>
      %33 = arith.addf %30, %32 : vector<16x128xf32>
      %c0_27 = arith.constant 0 : index
      %c0_28 = arith.constant 0 : index
      %34 = vector.load %arg9[%c0_27, %c0_28] : memref<16x128xf32, #tpu.memory_space<vmem>>, vector<16x128xf32>
      tpu.vector_store %arg9[%c0_27, %c0_28], %33 {strides = array<i32>} : memref<16x128xf32, #tpu.memory_space<vmem>>, vector<16x128xf32>,
    } else {
    }
    return
  }
  func.func @transform_0(%arg0: i32, %arg1: i32) -> (i32, i32) {
    %c0_i32 = arith.constant 0 : i32
    return %arg0, %arg1 : i32, i32
  }
  func.func @transform_1(%arg0: i32, %arg1: i32) -> (i32, i32) {
    %c0_i32 = arith.constant 0 : i32
    %c0_i32_0 = arith.constant 0 : i32
    return %arg1, %c0_i32 : i32, i32
  }
  func.func @transform_2(%arg0: i32, %arg1: i32) -> (i32, i32) {
    %c0_i32 = arith.constant 0 : i32
    %c0_i32_0 = arith.constant 0 : i32
    %c0_i32_1 = arith.constant 0 : i32
    return %c0_i32, %c0_i32_0 : i32, i32
  }
  func.func @transform_3(%arg0: i32, %arg1: i32) -> (i32, i32) {
    %c0_i32 = arith.constant 0 : i32
    %c0_i32_0 = arith.constant 0 : i32
    %c0_i32_1 = arith.constant 0 : i32
    return %c0_i32, %c0_i32_0 : i32, i32
  }
  func.func @transform_4(%arg0: i32, %arg1: i32) -> (i32, i32) {
    %c0_i32 = arith.constant 0 : i32
    %c0_i32_0 = arith.constant 0 : i32
    %c0_i32_1 = arith.constant 0 : i32
    return %c0_i32, %c0_i32_0 : i32, i32
  }
  func.func @transform_5(%arg0: i32, %arg1: i32) -> (i32, i32) {
    %c0_i32 = arith.constant 0 : i32
    %c0_i32_0 = arith.constant 0 : i32
    %c0_i32_1 = arith.constant 0 : i32
    return %c0_i32, %c0_i32_0 : i32, i32
  }
  func.func @transform_6(%arg0: i32, %arg1: i32) -> (i32, i32) {
    %c0_i32 = arith.constant 0 : i32
    %c0_i32_0 = arith.constant 0 : i32
    %c0_i32_1 = arith.constant 0 : i32
    return %c0_i32, %c0_i32_0 : i32, i32
  }
  func.func @transform_7(%arg0: i32, %arg1: i32) -> (i32, i32) {
    %c0_i32 = arith.constant 0 : i32
    %c0_i32_0 = arith.constant 0 : i32
    return %arg0, %c0_i32 : i32, i32
  }
}

</mosaic_0001>

<bundles_post_ra>
// kernel: tpu_custom_call.1
= control target key start
LH: loop header
LB: loop body
LE: loop exit
PB: predicated region body
PF: predicated region fallthrough
CT: control target
= control target key end

     0   :  { %12 = vsyncpa [#allocation4], 0  ;;  %s3747_s0 = inlined_call_operand.hbm [shape: bf16[16,256], index: 0, kind: input, shape index: {}]   ;;  %s3748_s1 = inlined_call_operand.hbm [shape: bf16[256,512], index: 1, kind: input, shape index: {}]   ;;  %s3749_s2 = inlined_call_operand.hbm [shape: f32[1,512], index: 2, kind: input, shape index: {}]   ;;  %s3750_s3 = inlined_call_operand.hbm [shape: bf16[512,768], index: 3, kind: input, shape index: {}]   ;;  %s3751_s4 = inlined_call_operand.vmem [shape: f32[1,768], index: 4, kind: input, shape index: {}]   ;;  %s3752_s5 = inlined_call_operand.hbm [shape: bf16[768,128], index: 5, kind: input, shape index: {}]   ;;  %s3753_s6 = inlined_call_operand.vmem [shape: f32[1,128], index: 6, kind: input, shape index: {}]   ;;  %s3754_s7 = inlined_call_operand.hbm [shape: f32[16,128], index: 7, kind: output, shape index: {}]  }
   0x1   :  { %13 = vsyncpa [#allocation7], 0 }
   0x2   :  { %14 = vsyncpa [#allocation10], 0 }
   0x3   :  { %15 = vsyncpa [#allocation5], 0  ;;  %s3610_s24 = smov [#allocation6]  }
   0x4   :  { %s33_s25 = sshll.u32 %s3610_s24, 4  ;;  %s34_s25 = int_to_ptr.vmem [resolvable:$true] %s33_s25 }
   0x5   :  { %s3490_s26 = scalar_lea.vmem %s34_s25, 8192  ;;  %p3495_p1 = scmp.lt.s32.totalorder %s34_s25, %s34_s25 }
   0x6   :  { %p3491_p0 = scmp.ne.s32.totalorder %s34_s25, %s3490_s26  ;;  %p3496_p2 = scmp.lt.s32.totalorder %s3490_s26, %s3490_s26 }
   0x8   :  { %p3497_p3 = por %p3496_p2, %p3495_p1 }
   0xa   :  { %p3498_p4 = pnand %p3497_p3, %p3491_p0 }
   0xc   :  { %3501 = shalt.err (!%p3498_p4)
}
   0xd   :  { %s3611_s27 = smov 256   ;;  %s3612_s28 = smov 16  }
   0xe   :  { %39 = dma.hbm_to_vmem [thread:$0]  %s3748_s1, 8192, %s34_s25, [#allocation7], %s3611_s27, %s3611_s27, %s3612_s28  }
   0xf   :  { %s3613_s8 = smov [#allocation9]  }
  0x10   :  { %s55_s9 = sshll.u32 %s3613_s8, 4  ;;  %s56_s9 = int_to_ptr.vmem [resolvable:$true] %s55_s9 }
  0x11   :  { %s3510_s10 = scalar_lea.vmem %s56_s9, 24576  ;;  %p3515_p6 = scmp.lt.s32.totalorder %s56_s9, %s56_s9 }
  0x12   :  { %p3511_p5 = scmp.ne.s32.totalorder %s56_s9, %s3510_s10  ;;  %p3516_p7 = scmp.lt.s32.totalorder %s3510_s10, %s3510_s10 }
  0x14   :  { %p3517_p8 = por %p3516_p7, %p3515_p6 }
  0x16   :  { %p3518_p9 = pnand %p3517_p8, %p3511_p5 }
  0x18   :  { %3521 = shalt.err (!%p3518_p9)
}
  0x19   :  { %s3614_s11 = smov 384   ;;  %s3615_s12 = smov 24  }
  0x1a   :  { %61 = dma.hbm_to_vmem [thread:$0]  %s3750_s3, 24576, %s56_s9, [#allocation10], %s3614_s11, %s3614_s11, %s3615_s12  }
  0x1b   :  { %s3616_s15 = smov [#allocation3]  }
  0x1c   :  { %s21_s16 = sshll.u32 %s3616_s15, 4  ;;  %s22_s16 = int_to_ptr.vmem [resolvable:$true] %s21_s16 }
  0x1d   :  { %s3530_s1 = scalar_lea.vmem %s22_s16, 256  ;;  %p3535_p11 = scmp.lt.s32.totalorder %s22_s16, %s22_s16 }
  0x1e   :  { %p3531_p10 = scmp.ne.s32.totalorder %s22_s16, %s3530_s1  ;;  %p3536_p12 = scmp.lt.s32.totalorder %s3530_s1, %s3530_s1 }
  0x20   :  { %p3537_p13 = por %p3536_p12, %p3535_p11 }
  0x22   :  { %p3538_p0 = pnand %p3537_p13, %p3531_p10 }
  0x24   :  { %3541 = shalt.err (!%p3538_p0)
}
  0x25   :  { %s3617_s17 = smov 128   ;;  %s3618_s18 = smov 8  }
  0x26   :  { %27 = dma.hbm_to_vmem [thread:$0]  %s3747_s0, 256, %s22_s16, [#allocation4], %s3617_s17, %s3617_s17, %s3618_s18  }
  0x27   :  { %s3619_s3 = smov [#allocation8]   ;;  %s3620_s22 = smov [#allocation11]  }
  0x28   :  { %s46_s21 = sshll.u32 %s3619_s3, 4  ;;  %s69_s23 = sshll.u32 %s3620_s22, 4  ;;  %s47_s21 = int_to_ptr.vmem [resolvable:$true] %s46_s21  ;;  %s70_s23 = int_to_ptr.vmem [resolvable:$true] %s69_s23 }
  0x29   :  { %s3550_s24 = scalar_lea.vmem %s47_s21, 64  ;;  %p3555_p2 = scmp.lt.s32.totalorder %s47_s21, %s47_s21 }
  0x2a   :  { %p3551_p1 = scmp.ne.s32.totalorder %s47_s21, %s3550_s24  ;;  %p3556_p3 = scmp.lt.s32.totalorder %s3550_s24, %s3550_s24 }
  0x2c   :  { %p3557_p4 = por %p3556_p3, %p3555_p2 }
  0x2e   :  { %p3558_p5 = pnand %p3557_p4, %p3551_p1 }
  0x30   :  { %3561 = shalt.err (!%p3558_p5)
}
  0x31   :  { %49 = dma.hbm_to_vmem [thread:$0]  %s3749_s2, 64, %s47_s21, [#allocation7]  }
  0x32   :  { %s3570_s27 = scalar_lea.vmem %s70_s23, 6144  ;;  %p3575_p7 = scmp.lt.s32.totalorder %s70_s23, %s70_s23 }
  0x33   :  { %p3571_p6 = scmp.ne.s32.totalorder %s70_s23, %s3570_s27  ;;  %p3576_p8 = scmp.lt.s32.totalorder %s3570_s27, %s3570_s27 }
  0x35   :  { %p3577_p9 = por %p3576_p8, %p3575_p7 }
  0x37   :  { %p3578_p10 = pnand %p3577_p9, %p3571_p6 }
  0x39   :  { %3581 = shalt.err (!%p3578_p10)
}
  0x3a   :  { %s3621_s0 = smov 64   ;;  %s3622_s28 = smov 4  }
  0x3b   :  { %75 = dma.hbm_to_vmem [thread:$0]  %s3752_s5, 6144, %s70_s23, [#allocation10], %s3621_s0, %s3621_s0, %s3622_s28  }
  0x3c   :  { %3602 = dma.done.wait [#allocation4], 256  }
  0x3d   :  { %3603 = vsyncadd [#allocation4], 4294967040 }
  0x3e   :  { %3604 = dma.done.wait [#allocation7], 8256  }
  0x3f   :  { %3605 = vsyncadd [#allocation7], 4294959040 }
  0x40   :  { %3606 = dma.done.wait [#allocation10], 30720  }
  0x41   :  { %3607 = vsyncadd [#allocation10], 4294936576  ;;  %v3050_v0 = vld [vmem:[#allocation6 + $0xe4] ss:$16 sps:$4 sm:$0xff]   ;;  %v3052_v1 = vld [vmem:[#allocation6 + $0xec] ss:$16 sps:$4 sm:$0xff]  }
  0x42   :  { %512 = vmatprep.subr.bf16.mxu0 %v3050_v0  ;;  %v3054_v2 = vld [vmem:[#allocation6 + $0xe0] ss:$16 sps:$4 sm:$0xff]   ;;  %v3055_v3 = vld [vmem:[#allocation6 + $0xe8] ss:$16 sps:$4 sm:$0xff]   ;;  %555 = vmatprep.subr.bf16.mxu1 %v3052_v1  ;;  %v3056_v4 = vld [vmem:[#allocation6 + $0xc4] ss:$16 sps:$4 sm:$0xff]  }
  0x43   :  { %513 = vmatpush1.bf16.msra.mxu0 %v3054_v2  ;;  %556 = vmatpush1.bf16.msra.mxu1 %v3055_v3  ;;  %v3058_v5 = vld [vmem:[#allocation6 + $0xcc] ss:$16 sps:$4 sm:$0xff]   ;;  %v3060_v6 = vld [vmem:[#allocation6 + $0xc0] ss:$16 sps:$4 sm:$0xff]   ;;  %v3061_v7 = vld [vmem:[#allocation6 + $0xc8] ss:$16 sps:$4 sm:$0xff]  }
  0x44   :  { %514 = vmatprep.subr.bf16.mxu0 %v3056_v4  ;;  %557 = vmatprep.subr.bf16.mxu1 %v3058_v5  ;;  %v3062_v8 = vld [vmem:[#allocation6 + $0xa4] ss:$16 sps:$4 sm:$0xff]   ;;  %v3064_v9 = vld [vmem:[#allocation6 + $0xac] ss:$16 sps:$4 sm:$0xff]   ;;  %v3066_v10 = vld [vmem:[#allocation6 + $0xa0] ss:$16 sps:$4 sm:$0xff]  }
  0x45   :  { %v3067_v11 = vld [vmem:[#allocation6 + $0xa8] ss:$16 sps:$4 sm:$0xff]   ;;  %v3068_v12 = vld [vmem:[#allocation6 + $0x84] ss:$16 sps:$4 sm:$0xff]   ;;  %v3070_v13 = vld [vmem:[#allocation6 + $0x8c] ss:$16 sps:$4 sm:$0xff]  }
  0x46   :  { %v3072_v14 = vld [vmem:[#allocation6 + $0x80] ss:$16 sps:$4 sm:$0xff]   ;;  %v3073_v15 = vld [vmem:[#allocation6 + $0x88] ss:$16 sps:$4 sm:$0xff]   ;;  %v3074_v16 = vld [vmem:[#allocation6 + $0x64] ss:$16 sps:$4 sm:$0xff]  }
  0x47   :  { %515 = vmatpush1.bf16.msra.mxu0 %v3060_v6  ;;  %558 = vmatpush1.bf16.msra.mxu1 %v3061_v7  ;;  %v3076_v17 = vld [vmem:[#allocation6 + $0x6c] ss:$16 sps:$4 sm:$0xff]   ;;  %v3078_v18 = vld [vmem:[#allocation6 + $0x60] ss:$16 sps:$4 sm:$0xff]   ;;  %v3079_v19 = vld [vmem:[#allocation6 + $0x68] ss:$16 sps:$4 sm:$0xff]  }
  0x48   :  { %516 = vmatprep.subr.bf16.mxu0 %v3062_v8  ;;  %559 = vmatprep.subr.bf16.mxu1 %v3064_v9  ;;  %v3080_v20 = vld [vmem:[#allocation6 + $0x44] ss:$16 sps:$4 sm:$0xff]   ;;  %v3082_v21 = vld [vmem:[#allocation6 + $0x4c] ss:$16 sps:$4 sm:$0xff]   ;;  %v3084_v22 = vld [vmem:[#allocation6 + $0x40] ss:$16 sps:$4 sm:$0xff]  }
  0x49   :  { %v3085_v23 = vld [vmem:[#allocation6 + $0x48] ss:$16 sps:$4 sm:$0xff]   ;;  %v3086_v24 = vld [vmem:[#allocation6 + $0x24] ss:$16 sps:$4 sm:$0xff]   ;;  %v3088_v25 = vld [vmem:[#allocation6 + $0x2c] ss:$16 sps:$4 sm:$0xff]  }
  0x4a   :  { %v3090_v26 = vld [vmem:[#allocation6 + $0x20] ss:$16 sps:$4 sm:$0xff]   ;;  %v3091_v27 = vld [vmem:[#allocation6 + $0x28] ss:$16 sps:$4 sm:$0xff]   ;;  %v3092_v28 = vld [vmem:[#allocation6 + $0x4] ss:$16 sps:$4 sm:$0xff]  }
  0x4b   :  { %517 = vmatpush1.bf16.msra.mxu0 %v3066_v10  ;;  %560 = vmatpush1.bf16.msra.mxu1 %v3067_v11  ;;  %v3094_v29 = vld [vmem:[#allocation6 + $0xc] ss:$16 sps:$4 sm:$0xff]   ;;  %v3096_v30 = vld [vmem:[#allocation6] ss:$16 sps:$4 sm:$0xff]   ;;  %v3097_v31 = vld [vmem:[#allocation6 + $0x8] ss:$16 sps:$4 sm:$0xff]  }
  0x4c   :  { %518 = vmatprep.subr.bf16.mxu0 %v3068_v12  ;;  %561 = vmatprep.subr.bf16.mxu1 %v3070_v13  ;;  %v3098_v32 = vld [vmem:[#allocation6 + $0x1e4] ss:$16 sps:$4 sm:$0xff]   ;;  %v3100_v33 = vld [vmem:[#allocation6 + $0x1ec] ss:$16 sps:$4 sm:$0xff]   ;;  %v3102_v34 = vld [vmem:[#allocation6 + $0x1e0] ss:$16 sps:$4 sm:$0xff]  }
  0x4d   :  { %v3103_v35 = vld [vmem:[#allocation6 + $0x1e8] ss:$16 sps:$4 sm:$0xff]   ;;  %v3104_v36 = vld [vmem:[#allocation6 + $0x1c4] ss:$16 sps:$4 sm:$0xff]   ;;  %v3106_v37 = vld [vmem:[#allocation6 + $0x1cc] ss:$16 sps:$4 sm:$0xff]  }
  0x4e   :  { %v3108_v38 = vld [vmem:[#allocation6 + $0x1c0] ss:$16 sps:$4 sm:$0xff]   ;;  %v3109_v39 = vld [vmem:[#allocation6 + $0x1c8] ss:$16 sps:$4 sm:$0xff]   ;;  %v3110_v40 = vld [vmem:[#allocation6 + $0x1a4] ss:$16 sps:$4 sm:$0xff]  }
  0x4f   :  { %519 = vmatpush1.bf16.msra.mxu0 %v3072_v14  ;;  %562 = vmatpush1.bf16.msra.mxu1 %v3073_v15  ;;  %v3112_v41 = vld [vmem:[#allocation6 + $0x1ac] ss:$16 sps:$4 sm:$0xff]   ;;  %v3114_v42 = vld [vmem:[#allocation6 + $0x1a0] ss:$16 sps:$4 sm:$0xff]   ;;  %v3115_v43 = vld [vmem:[#allocation6 + $0x1a8] ss:$16 sps:$4 sm:$0xff]  }
  0x50   :  { %520 = vmatprep.subr.bf16.mxu0 %v3074_v16  ;;  %563 = vmatprep.subr.bf16.mxu1 %v3076_v17  ;;  %v3116_v44 = vld [vmem:[#allocation6 + $0x184] ss:$16 sps:$4 sm:$0xff]   ;;  %v3118_v45 = vld [vmem:[#allocation6 + $0x18c] ss:$16 sps:$4 sm:$0xff]   ;;  %v3623_v48 = vmov 0   ;;  %s3624_s9 = smov [#allocation12]  }
  0x51   :  { %v106_v46 = vld [vmem:[#allocation3] sm:$0xff]  ;;  %v107_v47 = vld [vmem:[#allocation3 + $0x8] sm:$0xff]  ;;  %v3154_v11 = vld [vmem:[#allocation9 + $0x124] ss:$24 sps:$4 sm:$0xff]   ;;  %s2648_s10 = sshll.u32 %s3624_s9, 4  ;;  %s2649_s10 = int_to_ptr.vmem [resolvable:$true] %s2648_s10 }
  0x52   :  { %v108_v49 = vmax.bf16 %v3623_v48, %v106_v46  ;;  %v3120_v50 = vld [vmem:[#allocation6 + $0x180] ss:$16 sps:$4 sm:$0xff]   ;;  %v3121_v51 = vld [vmem:[#allocation6 + $0x188] ss:$16 sps:$4 sm:$0xff]   ;;  %v109_v52 = vmax.bf16 %v3623_v48, %v107_v47  ;;  %v3122_v53 = vld [vmem:[#allocation6 + $0x164] ss:$16 sps:$4 sm:$0xff]   ;;  %p3587_p12 = scmp.lt.s32.totalorder %s2649_s10, %s2649_s10 }
  0x53   :  { %521 = vmatpush1.bf16.msra.mxu0 %v3078_v18  ;;  %564 = vmatpush1.bf16.msra.mxu1 %v3079_v19  ;;  %v3124_v54 = vld [vmem:[#allocation6 + $0x16c] ss:$16 sps:$4 sm:$0xff]   ;;  %v3126_v56 = vld [vmem:[#allocation6 + $0x160] ss:$16 sps:$4 sm:$0xff]   ;;  %v3127_v57 = vld [vmem:[#allocation6 + $0x168] ss:$16 sps:$4 sm:$0xff]  }
  0x54   :  { %522 = vmatprep.subr.bf16.mxu0 %v3080_v20  ;;  %565 = vmatprep.subr.bf16.mxu1 %v3082_v21  ;;  %v2663_v55 = vcombine.high %v108_v49, %v109_v52  ;;  %v3128_v58 = vld [vmem:[#allocation6 + $0x144] ss:$16 sps:$4 sm:$0xff]   ;;  %v3130_v59 = vld [vmem:[#allocation6 + $0x14c] ss:$16 sps:$4 sm:$0xff]   ;;  %v3132_v60 = vld [vmem:[#allocation6 + $0x140] ss:$16 sps:$4 sm:$0xff]   ;;  %v2662_v8 = vcombine.low %v108_v49, %v109_v52 }
  0x55   :  { %v3133_v61 = vld [vmem:[#allocation6 + $0x148] ss:$16 sps:$4 sm:$0xff]   ;;  %v3134_v62 = vld [vmem:[#allocation6 + $0x124] ss:$16 sps:$4 sm:$0xff]   ;;  %v3136_v63 = vld [vmem:[#allocation6 + $0x12c] ss:$16 sps:$4 sm:$0xff]  }
  0x56   :  { %544 = vmatprep.mubr.bf16.mxu0 %v2663_v55  ;;  %587 = vmatprep.mubr.bf16.mxu1 %v2663_v55  ;;  %v3138_v0 = vld [vmem:[#allocation6 + $0x120] ss:$16 sps:$4 sm:$0xff]   ;;  %v3139_v1 = vld [vmem:[#allocation6 + $0x128] ss:$16 sps:$4 sm:$0xff]   ;;  %v3140_v2 = vld [vmem:[#allocation6 + $0x104] ss:$16 sps:$4 sm:$0xff]  }
  0x57   :  { %523 = vmatpush1.bf16.msra.mxu0 %v3084_v22  ;;  %566 = vmatpush1.bf16.msra.mxu1 %v3085_v23  ;;  %v3142_v3 = vld [vmem:[#allocation6 + $0x10c] ss:$16 sps:$4 sm:$0xff]   ;;  %v3144_v4 = vld [vmem:[#allocation6 + $0x100] ss:$16 sps:$4 sm:$0xff]   ;;  %v3145_v5 = vld [vmem:[#allocation6 + $0x108] ss:$16 sps:$4 sm:$0xff]  }
  0x58   :  { %524 = vmatprep.subr.bf16.mxu0 %v3086_v24  ;;  %567 = vmatprep.subr.bf16.mxu1 %v3088_v25  ;;  %v3148_v6 = vld [vmem:[#allocation9 + $0x154] ss:$24 sps:$4 sm:$0xff]   ;;  %v3146_v9 = vld [vmem:[#allocation9 + $0x150] ss:$24 sps:$4 sm:$0xff]   ;;  %v3157_v12 = vld [vmem:[#allocation9 + $0x424] ss:$24 sps:$4 sm:$0xff]  }
  0x59   :  { %v3151_v7 = vld [vmem:[#allocation9 + $0x454] ss:$24 sps:$4 sm:$0xff]   ;;  %v3149_v10 = vld [vmem:[#allocation9 + $0x450] ss:$24 sps:$4 sm:$0xff]   ;;  %v3152_v13 = vld [vmem:[#allocation9 + $0x120] ss:$24 sps:$4 sm:$0xff]  }
  0x5a   :  { %v3155_v14 = vld [vmem:[#allocation9 + $0x420] ss:$24 sps:$4 sm:$0xff]   ;;  %v3160_v15 = vld [vmem:[#allocation9 + $0xf4] ss:$24 sps:$4 sm:$0xff]   ;;  %v3158_v17 = vld [vmem:[#allocation9 + $0xf0] ss:$24 sps:$4 sm:$0xff]  }
  0x5b   :  { %525 = vmatpush1.bf16.msra.mxu0 %v3090_v26  ;;  %568 = vmatpush1.bf16.msra.mxu1 %v3091_v27  ;;  %v3163_v16 = vld [vmem:[#allocation9 + $0x3f4] ss:$24 sps:$4 sm:$0xff]   ;;  %v3161_v18 = vld [vmem:[#allocation9 + $0x3f0] ss:$24 sps:$4 sm:$0xff]   ;;  %v3166_v19 = vld [vmem:[#allocation9 + $0xc4] ss:$24 sps:$4 sm:$0xff]  }
  0x5c   :  { %526 = vmatprep.subr.bf16.mxu0 %v3092_v28  ;;  %569 = vmatprep.subr.bf16.mxu1 %v3094_v29  ;;  %v3169_v20 = vld [vmem:[#allocation9 + $0x3c4] ss:$24 sps:$4 sm:$0xff]   ;;  %v3164_v21 = vld [vmem:[#allocation9 + $0xc0] ss:$24 sps:$4 sm:$0xff]   ;;  %v3172_v23 = vld [vmem:[#allocation9 + $0x94] ss:$24 sps:$4 sm:$0xff]  }
  0x5d   :  { %v3167_v22 = vld [vmem:[#allocation9 + $0x3c0] ss:$24 sps:$4 sm:$0xff]   ;;  %v3175_v24 = vld [vmem:[#allocation9 + $0x394] ss:$24 sps:$4 sm:$0xff]   ;;  %v3170_v25 = vld [vmem:[#allocation9 + $0x90] ss:$24 sps:$4 sm:$0xff]  }
  0x5e   :  { %v3173_v26 = vld [vmem:[#allocation9 + $0x390] ss:$24 sps:$4 sm:$0xff]   ;;  %v3178_v27 = vld [vmem:[#allocation9 + $0x64] ss:$24 sps:$4 sm:$0xff]   ;;  %v3176_v29 = vld [vmem:[#allocation9 + $0x60] ss:$24 sps:$4 sm:$0xff]  }
  0x5f   :  { %527 = vmatpush1.bf16.msra.mxu0 %v3096_v30  ;;  %570 = vmatpush1.bf16.msra.mxu1 %v3097_v31  ;;  %v3181_v28 = vld [vmem:[#allocation9 + $0x364] ss:$24 sps:$4 sm:$0xff]   ;;  %v3179_v30 = vld [vmem:[#allocation9 + $0x360] ss:$24 sps:$4 sm:$0xff]   ;;  %v3184_v31 = vld [vmem:[#allocation9 + $0x34] ss:$24 sps:$4 sm:$0xff]  }
  0x60   :  { %528 = vmatprep.subr.bf16.mxu0 %v3098_v32  ;;  %571 = vmatprep.subr.bf16.mxu1 %v3100_v33  ;;  %v3187_v32 = vld [vmem:[#allocation9 + $0x334] ss:$24 sps:$4 sm:$0xff]   ;;  %v3182_v33 = vld [vmem:[#allocation9 + $0x30] ss:$24 sps:$4 sm:$0xff]   ;;  %v3203_v46 = vld [vmem:[#allocation9 + $0x5a0] ss:$24 sps:$4 sm:$0xff]  }
  0x61   :  { %v3208_v47 = vld [vmem:[#allocation9 + $0x274] ss:$24 sps:$4 sm:$0xff]   ;;  %v3206_v49 = vld [vmem:[#allocation9 + $0x270] ss:$24 sps:$4 sm:$0xff]   ;;  %v3217_v52 = vld [vmem:[#allocation9 + $0x544] ss:$24 sps:$4 sm:$0xff]  }
  0x62   :  { %v3211_v48 = vld [vmem:[#allocation9 + $0x574] ss:$24 sps:$4 sm:$0xff]  }
  0x63   :  { %529 = vmatpush2.bf16.msra.mxu0 %v3102_v34  ;;  %572 = vmatpush2.bf16.msra.mxu1 %v3103_v35  ;;  %v3185_v34 = vld [vmem:[#allocation9 + $0x330] ss:$24 sps:$4 sm:$0xff]   ;;  %v3190_v35 = vld [vmem:[#allocation9 + $0x4] ss:$24 sps:$4 sm:$0xff]   ;;  %v3220_v55 = vld [vmem:[#allocation9 + $0x214] ss:$24 sps:$4 sm:$0xff]  }
  0x64   :  { %530 = vmatprep.subr.bf16.mxu0 %v3104_v36  ;;  %573 = vmatprep.subr.bf16.mxu1 %v3106_v37  ;;  %v3193_v36 = vld [vmem:[#allocation9 + $0x304] ss:$24 sps:$4 sm:$0xff]   ;;  %v3188_v37 = vld [vmem:[#allocation9] ss:$24 sps:$4 sm:$0xff]  }
  0x67   :  { %531 = vmatpush2.bf16.msra.mxu0 %v3108_v38  ;;  %574 = vmatpush2.bf16.msra.mxu1 %v3109_v39  ;;  %v3191_v38 = vld [vmem:[#allocation9 + $0x300] ss:$24 sps:$4 sm:$0xff]   ;;  %v3196_v39 = vld [vmem:[#allocation9 + $0x2d4] ss:$24 sps:$4 sm:$0xff]  }
  0x68   :  { %532 = vmatprep.subr.bf16.mxu0 %v3110_v40  ;;  %575 = vmatprep.subr.bf16.mxu1 %v3112_v41  ;;  %v3199_v40 = vld [vmem:[#allocation9 + $0x5d4] ss:$24 sps:$4 sm:$0xff]   ;;  %v3194_v41 = vld [vmem:[#allocation9 + $0x2d0] ss:$24 sps:$4 sm:$0xff]  }
  0x6b   :  { %533 = vmatpush2.bf16.msra.mxu0 %v3114_v42  ;;  %576 = vmatpush2.bf16.msra.mxu1 %v3115_v43  ;;  %v3197_v42 = vld [vmem:[#allocation9 + $0x5d0] ss:$24 sps:$4 sm:$0xff]   ;;  %v3202_v43 = vld [vmem:[#allocation9 + $0x2a4] ss:$24 sps:$4 sm:$0xff]  }
  0x6c   :  { %534 = vmatprep.subr.bf16.mxu0 %v3116_v44  ;;  %577 = vmatprep.subr.bf16.mxu1 %v3118_v45  ;;  %v3205_v44 = vld [vmem:[#allocation9 + $0x5a4] ss:$24 sps:$4 sm:$0xff]   ;;  %v3200_v45 = vld [vmem:[#allocation9 + $0x2a0] ss:$24 sps:$4 sm:$0xff]  }
  0x6f   :  { %535 = vmatpush2.bf16.msra.mxu0 %v3120_v50  ;;  %578 = vmatpush2.bf16.msra.mxu1 %v3121_v51  ;;  %v3209_v50 = vld [vmem:[#allocation9 + $0x570] ss:$24 sps:$4 sm:$0xff]   ;;  %v3214_v51 = vld [vmem:[#allocation9 + $0x244] ss:$24 sps:$4 sm:$0xff]  }
  0x70   :  { %536 = vmatprep.subr.bf16.mxu0 %v3122_v53  ;;  %579 = vmatprep.subr.bf16.mxu1 %v3124_v54  ;;  %v3212_v53 = vld [vmem:[#allocation9 + $0x240] ss:$24 sps:$4 sm:$0xff]  }
  0x71   :  { %v3215_v54 = vld [vmem:[#allocation9 + $0x540] ss:$24 sps:$4 sm:$0xff]  }
  0x73   :  { %537 = vmatpush2.bf16.msra.mxu0 %v3126_v56  ;;  %580 = vmatpush2.bf16.msra.mxu1 %v3127_v57  ;;  %v3223_v56 = vld [vmem:[#allocation9 + $0x514] ss:$24 sps:$4 sm:$0xff]   ;;  %v3218_v57 = vld [vmem:[#allocation9 + $0x210] ss:$24 sps:$4 sm:$0xff]  }
  0x74   :  { %538 = vmatprep.subr.bf16.mxu0 %v3128_v58  ;;  %581 = vmatprep.subr.bf16.mxu1 %v3130_v59  ;;  %v3221_v58 = vld [vmem:[#allocation9 + $0x510] ss:$24 sps:$4 sm:$0xff]   ;;  %v3226_v59 = vld [vmem:[#allocation9 + $0x1e4] ss:$24 sps:$4 sm:$0xff]  }
  0x77   :  { %539 = vmatpush2.bf16.msra.mxu0 %v3132_v60  ;;  %582 = vmatpush2.bf16.msra.mxu1 %v3133_v61  ;;  %v3229_v60 = vld [vmem:[#allocation9 + $0x4e4] ss:$24 sps:$4 sm:$0xff]   ;;  %v3224_v61 = vld [vmem:[#allocation9 + $0x1e0] ss:$24 sps:$4 sm:$0xff]  }
  0x78   :  { %540 = vmatprep.subr.bf16.mxu0 %v3134_v62  ;;  %583 = vmatprep.subr.bf16.mxu1 %v3136_v63  ;;  %v3227_v62 = vld [vmem:[#allocation9 + $0x4e0] ss:$24 sps:$4 sm:$0xff]   ;;  %v3232_v63 = vld [vmem:[#allocation9 + $0x1b4] ss:$24 sps:$4 sm:$0xff]  }
  0x7b   :  { %541 = vmatpush2.bf16.msra.mxu0 %v3138_v0  ;;  %584 = vmatpush2.bf16.msra.mxu1 %v3139_v1  ;;  %v3235_v0 = vld [vmem:[#allocation9 + $0x4b4] ss:$24 sps:$4 sm:$0xff]   ;;  %v3230_v1 = vld [vmem:[#allocation9 + $0x1b0] ss:$24 sps:$4 sm:$0xff]  }
  0x7c   :  { %542 = vmatprep.subr.bf16.mxu0 %v3140_v2  ;;  %585 = vmatprep.subr.bf16.mxu1 %v3142_v3  ;;  %v3233_v2 = vld [vmem:[#allocation9 + $0x4b0] ss:$24 sps:$4 sm:$0xff]   ;;  %v3238_v3 = vld [vmem:[#allocation9 + $0x184] ss:$24 sps:$4 sm:$0xff]  }
  0x7f   :  { %543 = vmatpush2.bf16.msra.mxu0 %v3144_v4  ;;  %586 = vmatpush2.bf16.msra.mxu1 %v3145_v5  ;;  %v3241_v4 = vld [vmem:[#allocation9 + $0x484] ss:$24 sps:$4 sm:$0xff]   ;;  %v3236_v5 = vld [vmem:[#allocation9 + $0x180] ss:$24 sps:$4 sm:$0xff]  }
  0x80   :  { %1851 = vmatprep.subr.bf16.mxu0 %v3148_v6  ;;  %1894 = vmatprep.subr.bf16.mxu1 %v3151_v7  ;;  %v3239_v6 = vld [vmem:[#allocation9 + $0x480] ss:$24 sps:$4 sm:$0xff]   ;;  %v3244_v7 = vld [vmem:[#allocation9 + $0x15c] ss:$24 sps:$4 sm:$0xff]  }
  0x82   :  { %545 = vmatmul.mubr.bf16.vlgmr.msra.gmra.mxu0 %v2662_v8  ;;  %588 = vmatmul.mubr.bf16.vlgmr.msra.gmra.mxu1 %v2662_v8  ;;  %v3247_v8 = vld [vmem:[#allocation9 + $0x45c] ss:$24 sps:$4 sm:$0xff]  }
  0x83   :  { %1852 = vmatpush1.bf16.msra.mxu0 %v3146_v9  ;;  %1895 = vmatpush1.bf16.msra.mxu1 %v3149_v10  ;;  %v627_v9 = vlaneseq }
  0x84   :  { %1853 = vmatprep.subr.bf16.mxu0 %v3154_v11  ;;  %1896 = vmatprep.subr.bf16.mxu1 %v3157_v12 }
  0x85   :  { %v3683_v10 = vshrl.u32 %v627_v9, 7  ;;  %v3281_v9 = vld [vmem:[#allocation9 + $0x338] ss:$24 sps:$4 sm:$0xff]  }
  0x87   :  { %1854 = vmatpush1.bf16.msra.mxu0 %v3152_v13  ;;  %1897 = vmatpush1.bf16.msra.mxu1 %v3155_v14  ;;  %v633_v11 = vsub.s32 1, %v3683_v10  ;;  %v641_v12 = vsub.s32 3, %v3683_v10  ;;  %v629_v13 = vsub.s32 0, %v3683_v10  ;;  %v637_v14 = vsub.s32 2, %v3683_v10 }
  0x88   :  { %1855 = vmatprep.subr.bf16.mxu0 %v3160_v15  ;;  %1898 = vmatprep.subr.bf16.mxu1 %v3163_v16  ;;  %v625_v15 = vld [vmem:[#allocation8] sm:$0xf] }
  0x8b   :  { %1856 = vmatpush1.bf16.msra.mxu0 %v3158_v17  ;;  %1899 = vmatpush1.bf16.msra.mxu1 %v3161_v18  ;;  %v634_v18 = vrot.slane %v625_v15, %v633_v11 }
  0x8c   :  { %1857 = vmatprep.subr.bf16.mxu0 %v3166_v19  ;;  %1900 = vmatprep.subr.bf16.mxu1 %v3169_v20  ;;  %v642_v19 = vrot.slane %v625_v15, %v641_v12  ;;  %v630_v20 = vrot.slane %v625_v15, %v629_v13 }
  0x8f   :  { %1858 = vmatpush1.bf16.msra.mxu0 %v3164_v21  ;;  %1901 = vmatpush1.bf16.msra.mxu1 %v3167_v22  ;;  %v638_v21 = vrot.slane %v625_v15, %v637_v14  ;;  %v3286_v15 = vld [vmem:[#allocation9 + $0xc] ss:$24 sps:$4 sm:$0xff]  }
  0x90   :  { %1859 = vmatprep.subr.bf16.mxu0 %v3172_v23  ;;  %1902 = vmatprep.subr.bf16.mxu1 %v3175_v24 }
  0x93   :  { %1860 = vmatpush1.bf16.msra.mxu0 %v3170_v25  ;;  %1903 = vmatpush1.bf16.msra.mxu1 %v3173_v26 }
  0x94   :  { %1861 = vmatprep.subr.bf16.mxu0 %v3178_v27  ;;  %1904 = vmatprep.subr.bf16.mxu1 %v3181_v28 }
  0x97   :  { %1862 = vmatpush1.bf16.msra.mxu0 %v3176_v29  ;;  %1905 = vmatpush1.bf16.msra.mxu1 %v3179_v30 }
  0x98   :  { %1863 = vmatprep.subr.bf16.mxu0 %v3184_v31  ;;  %1906 = vmatprep.subr.bf16.mxu1 %v3187_v32 }
  0x9b   :  { %1864 = vmatpush1.bf16.msra.mxu0 %v3182_v33  ;;  %1907 = vmatpush1.bf16.msra.mxu1 %v3185_v34 }
  0x9c   :  { %1865 = vmatprep.subr.bf16.mxu0 %v3190_v35  ;;  %1908 = vmatprep.subr.bf16.mxu1 %v3193_v36 }
  0x9f   :  { %1866 = vmatpush1.bf16.msra.mxu0 %v3188_v37  ;;  %1909 = vmatpush1.bf16.msra.mxu1 %v3191_v38 }
  0xa0   :  { %1867 = vmatprep.subr.bf16.mxu0 %v3196_v39  ;;  %1910 = vmatprep.subr.bf16.mxu1 %v3199_v40 }
  0xa3   :  { %1868 = vmatpush2.bf16.msra.mxu0 %v3194_v41  ;;  %1911 = vmatpush2.bf16.msra.mxu1 %v3197_v42 }
  0xa4   :  { %1869 = vmatprep.subr.bf16.mxu0 %v3202_v43  ;;  %1912 = vmatprep.subr.bf16.mxu1 %v3205_v44 }
  0xa7   :  { %1870 = vmatpush2.bf16.msra.mxu0 %v3200_v45  ;;  %1913 = vmatpush2.bf16.msra.mxu1 %v3203_v46  ;;  %v3242_v46 = vld [vmem:[#allocation9 + $0x158] ss:$24 sps:$4 sm:$0xff]  }
  0xa8   :  { %1871 = vmatprep.subr.bf16.mxu0 %v3208_v47  ;;  %1914 = vmatprep.subr.bf16.mxu1 %v3211_v48  ;;  %v3245_v47 = vld [vmem:[#allocation9 + $0x458] ss:$24 sps:$4 sm:$0xff]  }
  0xab   :  { %1872 = vmatpush2.bf16.msra.mxu0 %v3206_v49  ;;  %1915 = vmatpush2.bf16.msra.mxu1 %v3209_v50  ;;  %v3250_v50 = vld [vmem:[#allocation9 + $0x12c] ss:$24 sps:$4 sm:$0xff]  }
  0xac   :  { %1873 = vmatprep.subr.bf16.mxu0 %v3214_v51  ;;  %1916 = vmatprep.subr.bf16.mxu1 %v3217_v52  ;;  %v3253_v51 = vld [vmem:[#allocation9 + $0x42c] ss:$24 sps:$4 sm:$0xff]   ;;  %v3248_v52 = vld [vmem:[#allocation9 + $0x128] ss:$24 sps:$4 sm:$0xff]  }
  0xaf   :  { %1874 = vmatpush2.bf16.msra.mxu0 %v3212_v53  ;;  %1917 = vmatpush2.bf16.msra.mxu1 %v3215_v54  ;;  %v3251_v53 = vld [vmem:[#allocation9 + $0x428] ss:$24 sps:$4 sm:$0xff]   ;;  %v3256_v54 = vld [vmem:[#allocation9 + $0xfc] ss:$24 sps:$4 sm:$0xff]  }
  0xb0   :  { %1875 = vmatprep.subr.bf16.mxu0 %v3220_v55  ;;  %1918 = vmatprep.subr.bf16.mxu1 %v3223_v56  ;;  %v3259_v55 = vld [vmem:[#allocation9 + $0x3fc] ss:$24 sps:$4 sm:$0xff]   ;;  %v3254_v56 = vld [vmem:[#allocation9 + $0xf8] ss:$24 sps:$4 sm:$0xff]  }
  0xb3   :  { %1876 = vmatpush2.bf16.msra.mxu0 %v3218_v57  ;;  %1919 = vmatpush2.bf16.msra.mxu1 %v3221_v58  ;;  %v3257_v57 = vld [vmem:[#allocation9 + $0x3f8] ss:$24 sps:$4 sm:$0xff]   ;;  %v3262_v58 = vld [vmem:[#allocation9 + $0xcc] ss:$24 sps:$4 sm:$0xff]  }
  0xb4   :  { %1877 = vmatprep.subr.bf16.mxu0 %v3226_v59  ;;  %1920 = vmatprep.subr.bf16.mxu1 %v3229_v60  ;;  %v3265_v59 = vld [vmem:[#allocation9 + $0x3cc] ss:$24 sps:$4 sm:$0xff]   ;;  %v3260_v60 = vld [vmem:[#allocation9 + $0xc8] ss:$24 sps:$4 sm:$0xff]  }
  0xb7   :  { %1878 = vmatpush2.bf16.msra.mxu0 %v3224_v61  ;;  %1921 = vmatpush2.bf16.msra.mxu1 %v3227_v62  ;;  %v3263_v61 = vld [vmem:[#allocation9 + $0x3c8] ss:$24 sps:$4 sm:$0xff]   ;;  %v3268_v62 = vld [vmem:[#allocation9 + $0x9c] ss:$24 sps:$4 sm:$0xff]  }
  0xb8   :  { %1879 = vmatprep.subr.bf16.mxu0 %v3232_v63  ;;  %1922 = vmatprep.subr.bf16.mxu1 %v3235_v0  ;;  %v3271_v63 = vld [vmem:[#allocation9 + $0x39c] ss:$24 sps:$4 sm:$0xff]   ;;  %v3266_v0 = vld [vmem:[#allocation9 + $0x98] ss:$24 sps:$4 sm:$0xff]  }
  0xbb   :  { %1880 = vmatpush2.bf16.msra.mxu0 %v3230_v1  ;;  %1923 = vmatpush2.bf16.msra.mxu1 %v3233_v2  ;;  %v3269_v1 = vld [vmem:[#allocation9 + $0x398] ss:$24 sps:$4 sm:$0xff]   ;;  %v3274_v2 = vld [vmem:[#allocation9 + $0x6c] ss:$24 sps:$4 sm:$0xff]  }
  0xbc   :  { %1881 = vmatprep.subr.bf16.mxu0 %v3238_v3  ;;  %1924 = vmatprep.subr.bf16.mxu1 %v3241_v4  ;;  %v3277_v3 = vld [vmem:[#allocation9 + $0x36c] ss:$24 sps:$4 sm:$0xff]   ;;  %v3272_v4 = vld [vmem:[#allocation9 + $0x68] ss:$24 sps:$4 sm:$0xff]  }
  0xbf   :  { %1882 = vmatpush2.bf16.msra.mxu0 %v3236_v5  ;;  %1925 = vmatpush2.bf16.msra.mxu1 %v3239_v6  ;;  %v3275_v5 = vld [vmem:[#allocation9 + $0x368] ss:$24 sps:$4 sm:$0xff]   ;;  %v3280_v6 = vld [vmem:[#allocation9 + $0x3c] ss:$24 sps:$4 sm:$0xff]  }
  0xc0   :  { %1937 = vmatprep.subr.bf16.mxu0 %v3244_v7  ;;  %1980 = vmatprep.subr.bf16.mxu1 %v3247_v8  ;;  %v3283_v7 = vld [vmem:[#allocation9 + $0x33c] ss:$24 sps:$4 sm:$0xff]   ;;  %v3278_v8 = vld [vmem:[#allocation9 + $0x38] ss:$24 sps:$4 sm:$0xff]  }
 0x142   :  { %v546_v16 = vpop.f32.mrf.mxu0  ;;  %v589_v17 = vpop.f32.mrf.mxu1 }
 0x143   :  { %v647_v30 = vadd.f32 %v630_v20, %v546_v16  ;;  %v649_v31 = vadd.f32 %v638_v21, %v589_v17  ;;  %v3289_v16 = vld [vmem:[#allocation9 + $0x30c] ss:$24 sps:$4 sm:$0xff]   ;;  %v3284_v17 = vld [vmem:[#allocation9 + $0x8] ss:$24 sps:$4 sm:$0xff]  }
 0x144   :  { %v548_v22 = vpop.f32.mrf.mxu0  ;;  %v591_v23 = vpop.f32.mrf.mxu1 }
 0x145   :  { %v648_v26 = vadd.f32 %v634_v18, %v548_v22  ;;  %v650_v27 = vadd.f32 %v642_v19, %v591_v23  ;;  %v655_v42 = vmax.f32 %v647_v30, 0.0  ;;  %v657_v43 = vmax.f32 %v649_v31, 0.0  ;;  %v3293_v22 = vld [vmem:[#allocation9 + $0x5d8] ss:$24 sps:$4 sm:$0xff]   ;;  %v3298_v23 = vld [vmem:[#allocation9 + $0x2ac] ss:$24 sps:$4 sm:$0xff]  }
 0x146   :  { %v550_v24 = vpop.f32.mrf.mxu0  ;;  %v593_v25 = vpop.f32.mrf.mxu1  ;;  %v3305_v30 = vld [vmem:[#allocation9 + $0x578] ss:$24 sps:$4 sm:$0xff]   ;;  %v3310_v31 = vld [vmem:[#allocation9 + $0x24c] ss:$24 sps:$4 sm:$0xff]  }
 0x147   :  { %v651_v28 = vadd.f32 %v630_v20, %v550_v24  ;;  %v653_v29 = vadd.f32 %v638_v21, %v593_v25  ;;  %v656_v38 = vmax.f32 %v648_v26, 0.0  ;;  %v658_v39 = vmax.f32 %v650_v27, 0.0  ;;  %v3295_v20 = vld [vmem:[#allocation9 + $0x5dc] ss:$24 sps:$4 sm:$0xff]   ;;  %v3290_v21 = vld [vmem:[#allocation9 + $0x2d8] ss:$24 sps:$4 sm:$0xff]  }
 0x148   :  { %v552_v32 = vpop.f32.mrf.mxu0  ;;  %v595_v33 = vpop.f32.mrf.mxu1  ;;  %v3301_v24 = vld [vmem:[#allocation9 + $0x5ac] ss:$24 sps:$4 sm:$0xff]   ;;  %v3296_v25 = vld [vmem:[#allocation9 + $0x2a8] ss:$24 sps:$4 sm:$0xff]   ;;  %v3304_v27 = vld [vmem:[#allocation9 + $0x27c] ss:$24 sps:$4 sm:$0xff]  }
 0x149   :  { %v652_v34 = vadd.f32 %v634_v18, %v552_v32  ;;  %v654_v35 = vadd.f32 %v642_v19, %v595_v33  ;;  %v659_v36 = vmax.f32 %v651_v28, 0.0  ;;  %v661_v37 = vmax.f32 %v653_v29, 0.0  ;;  %v3287_v18 = vld [vmem:[#allocation9 + $0x308] ss:$24 sps:$4 sm:$0xff]   ;;  %v3292_v19 = vld [vmem:[#allocation9 + $0x2dc] ss:$24 sps:$4 sm:$0xff]  }
 0x14a   :  { %v3299_v26 = vld [vmem:[#allocation9 + $0x5a8] ss:$24 sps:$4 sm:$0xff]   ;;  %v3307_v28 = vld [vmem:[#allocation9 + $0x57c] ss:$24 sps:$4 sm:$0xff]   ;;  %v3302_v29 = vld [vmem:[#allocation9 + $0x278] ss:$24 sps:$4 sm:$0xff]  }
 0x14b   :  { %v660_v40 = vmax.f32 %v652_v34, 0.0  ;;  %v662_v41 = vmax.f32 %v654_v35, 0.0  ;;  %v3701_v48 = vpack.c.bf16 %v659_v36, %v655_v42  ;;  %v3703_v49 = vpack.c.bf16 %v661_v37, %v657_v43  ;;  %v3313_v32 = vld [vmem:[#allocation9 + $0x54c] ss:$24 sps:$4 sm:$0xff]   ;;  %v3308_v33 = vld [vmem:[#allocation9 + $0x248] ss:$24 sps:$4 sm:$0xff]  }
 0x14c   :  { %v3311_v34 = vld [vmem:[#allocation9 + $0x548] ss:$24 sps:$4 sm:$0xff]   ;;  %v3316_v35 = vld [vmem:[#allocation9 + $0x21c] ss:$24 sps:$4 sm:$0xff]   ;;  %v3314_v37 = vld [vmem:[#allocation9 + $0x218] ss:$24 sps:$4 sm:$0xff]  }
 0x14d   :  { %v3697_v44 = vpack.c.bf16 %v660_v40, %v656_v38  ;;  %v3699_v45 = vpack.c.bf16 %v662_v41, %v658_v39  ;;  %v3319_v36 = vld [vmem:[#allocation9 + $0x51c] ss:$24 sps:$4 sm:$0xff]   ;;  %v3317_v38 = vld [vmem:[#allocation9 + $0x518] ss:$24 sps:$4 sm:$0xff]   ;;  %v3322_v39 = vld [vmem:[#allocation9 + $0x1ec] ss:$24 sps:$4 sm:$0xff]  }
 0x14e   :  { %v3325_v40 = vld [vmem:[#allocation9 + $0x4ec] ss:$24 sps:$4 sm:$0xff]   ;;  %v3320_v41 = vld [vmem:[#allocation9 + $0x1e8] ss:$24 sps:$4 sm:$0xff]   ;;  %v3328_v43 = vld [vmem:[#allocation9 + $0x1bc] ss:$24 sps:$4 sm:$0xff]  }
 0x14f   :  { %1883 = vmatprep.mubr.bf16.mxu0 %v3697_v44  ;;  %1926 = vmatprep.mubr.bf16.mxu1 %v3699_v45  ;;  %v3323_v42 = vld [vmem:[#allocation9 + $0x4e8] ss:$24 sps:$4 sm:$0xff]  }
 0x150   :  { %1884 = vmatmul.mubr.bf16.vlgmr.msra.gmra.mxu0 %v3701_v48  ;;  %1927 = vmatmul.mubr.bf16.vlgmr.msra.gmra.mxu1 %v3703_v49 }
 0x151   :  { %1938 = vmatpush1.bf16.msra.mxu0 %v3242_v46  ;;  %1981 = vmatpush1.bf16.msra.mxu1 %v3245_v47  ;;  %v3331_v46 = vld [vmem:[#allocation9 + $0x4bc] ss:$24 sps:$4 sm:$0xff]   ;;  %v3326_v47 = vld [vmem:[#allocation9 + $0x1b8] ss:$24 sps:$4 sm:$0xff]  }
 0x152   :  { %1969 = vmatprep.mubr.bf16.mxu0 %v3697_v44  ;;  %2012 = vmatprep.mubr.bf16.mxu1 %v3699_v45 }
 0x153   :  { %1939 = vmatprep.subr.bf16.mxu0 %v3250_v50  ;;  %1982 = vmatprep.subr.bf16.mxu1 %v3253_v51  ;;  %v3329_v50 = vld [vmem:[#allocation9 + $0x4b8] ss:$24 sps:$4 sm:$0xff]   ;;  %v3334_v51 = vld [vmem:[#allocation9 + $0x18c] ss:$24 sps:$4 sm:$0xff]  }
 0x155   :  { %1940 = vmatpush1.bf16.msra.mxu0 %v3248_v52  ;;  %1983 = vmatpush1.bf16.msra.mxu1 %v3251_v53  ;;  %v3337_v52 = vld [vmem:[#allocation9 + $0x48c] ss:$24 sps:$4 sm:$0xff]   ;;  %v3332_v53 = vld [vmem:[#allocation9 + $0x188] ss:$24 sps:$4 sm:$0xff]  }
 0x156   :  { %1941 = vmatprep.subr.bf16.mxu0 %v3256_v54  ;;  %1984 = vmatprep.subr.bf16.mxu1 %v3259_v55  ;;  %v3335_v54 = vld [vmem:[#allocation9 + $0x488] ss:$24 sps:$4 sm:$0xff]   ;;  %v3340_v55 = vld [vmem:[#allocation9 + $0x164] ss:$24 sps:$4 sm:$0xff]  }
 0x159   :  { %1942 = vmatpush1.bf16.msra.mxu0 %v3254_v56  ;;  %1985 = vmatpush1.bf16.msra.mxu1 %v3257_v57  ;;  %v3343_v56 = vld [vmem:[#allocation9 + $0x464] ss:$24 sps:$4 sm:$0xff]   ;;  %v3338_v57 = vld [vmem:[#allocation9 + $0x160] ss:$24 sps:$4 sm:$0xff]  }
 0x15a   :  { %1943 = vmatprep.subr.bf16.mxu0 %v3262_v58  ;;  %1986 = vmatprep.subr.bf16.mxu1 %v3265_v59  ;;  %v3341_v58 = vld [vmem:[#allocation9 + $0x460] ss:$24 sps:$4 sm:$0xff]   ;;  %v3346_v59 = vld [vmem:[#allocation9 + $0x134] ss:$24 sps:$4 sm:$0xff]  }
 0x15d   :  { %1944 = vmatpush1.bf16.msra.mxu0 %v3260_v60  ;;  %1987 = vmatpush1.bf16.msra.mxu1 %v3263_v61  ;;  %v3349_v60 = vld [vmem:[#allocation9 + $0x434] ss:$24 sps:$4 sm:$0xff]   ;;  %v3344_v61 = vld [vmem:[#allocation9 + $0x130] ss:$24 sps:$4 sm:$0xff]  }
 0x15e   :  { %1945 = vmatprep.subr.bf16.mxu0 %v3268_v62  ;;  %1988 = vmatprep.subr.bf16.mxu1 %v3271_v63  ;;  %v3347_v62 = vld [vmem:[#allocation9 + $0x430] ss:$24 sps:$4 sm:$0xff]   ;;  %v3352_v63 = vld [vmem:[#allocation9 + $0x104] ss:$24 sps:$4 sm:$0xff]  }
 0x161   :  { %1946 = vmatpush1.bf16.msra.mxu0 %v3266_v0  ;;  %1989 = vmatpush1.bf16.msra.mxu1 %v3269_v1  ;;  %v3355_v0 = vld [vmem:[#allocation9 + $0x404] ss:$24 sps:$4 sm:$0xff]   ;;  %v3350_v1 = vld [vmem:[#allocation9 + $0x100] ss:$24 sps:$4 sm:$0xff]  }
 0x162   :  { %1947 = vmatprep.subr.bf16.mxu0 %v3274_v2  ;;  %1990 = vmatprep.subr.bf16.mxu1 %v3277_v3  ;;  %v3353_v2 = vld [vmem:[#allocation9 + $0x400] ss:$24 sps:$4 sm:$0xff]   ;;  %v3358_v3 = vld [vmem:[#allocation9 + $0xd4] ss:$24 sps:$4 sm:$0xff]  }
 0x165   :  { %1948 = vmatpush1.bf16.msra.mxu0 %v3272_v4  ;;  %1991 = vmatpush1.bf16.msra.mxu1 %v3275_v5  ;;  %v3361_v4 = vld [vmem:[#allocation9 + $0x3d4] ss:$24 sps:$4 sm:$0xff]   ;;  %v3356_v5 = vld [vmem:[#allocation9 + $0xd0] ss:$24 sps:$4 sm:$0xff]  }
 0x166   :  { %1949 = vmatprep.subr.bf16.mxu0 %v3280_v6  ;;  %1992 = vmatprep.subr.bf16.mxu1 %v3283_v7  ;;  %v3364_v6 = vld [vmem:[#allocation9 + $0xa4] ss:$24 sps:$4 sm:$0xff]   ;;  %v3362_v7 = vld [vmem:[#allocation9 + $0xa0] ss:$24 sps:$4 sm:$0xff]  }
 0x169   :  { %1950 = vmatpush1.bf16.msra.mxu0 %v3278_v8  ;;  %1993 = vmatpush1.bf16.msra.mxu1 %v3281_v9  ;;  %v3365_v8 = vld [vmem:[#allocation9 + $0x3a0] ss:$24 sps:$4 sm:$0xff]   ;;  %v3370_v9 = vld [vmem:[#allocation9 + $0x74] ss:$24 sps:$4 sm:$0xff]  }
 0x16a   :  { %1951 = vmatprep.subr.bf16.mxu0 %v3286_v15  ;;  %1994 = vmatprep.subr.bf16.mxu1 %v3289_v16  ;;  %v3373_v15 = vld [vmem:[#allocation9 + $0x374] ss:$24 sps:$4 sm:$0xff]   ;;  %v3368_v16 = vld [vmem:[#allocation9 + $0x70] ss:$24 sps:$4 sm:$0xff]  }
 0x16d   :  { %1952 = vmatpush1.bf16.msra.mxu0 %v3284_v17  ;;  %1995 = vmatpush1.bf16.msra.mxu1 %v3287_v18  ;;  %v3371_v17 = vld [vmem:[#allocation9 + $0x370] ss:$24 sps:$4 sm:$0xff]   ;;  %v3376_v18 = vld [vmem:[#allocation9 + $0x44] ss:$24 sps:$4 sm:$0xff]  }
 0x16e   :  { %1953 = vmatprep.subr.bf16.mxu0 %v3292_v19  ;;  %1996 = vmatprep.subr.bf16.mxu1 %v3295_v20  ;;  %v3379_v19 = vld [vmem:[#allocation9 + $0x344] ss:$24 sps:$4 sm:$0xff]   ;;  %v3374_v20 = vld [vmem:[#allocation9 + $0x40] ss:$24 sps:$4 sm:$0xff]  }
 0x171   :  { %1954 = vmatpush2.bf16.msra.mxu0 %v3290_v21  ;;  %1997 = vmatpush2.bf16.msra.mxu1 %v3293_v22  ;;  %v3377_v21 = vld [vmem:[#allocation9 + $0x340] ss:$24 sps:$4 sm:$0xff]   ;;  %v3382_v22 = vld [vmem:[#allocation9 + $0x14] ss:$24 sps:$4 sm:$0xff]  }
 0x172   :  { %1955 = vmatprep.subr.bf16.mxu0 %v3298_v23  ;;  %1998 = vmatprep.subr.bf16.mxu1 %v3301_v24  ;;  %v3385_v23 = vld [vmem:[#allocation9 + $0x314] ss:$24 sps:$4 sm:$0xff]   ;;  %v3380_v24 = vld [vmem:[#allocation9 + $0x10] ss:$24 sps:$4 sm:$0xff]  }
 0x175   :  { %1956 = vmatpush2.bf16.msra.mxu0 %v3296_v25  ;;  %1999 = vmatpush2.bf16.msra.mxu1 %v3299_v26  ;;  %v3383_v25 = vld [vmem:[#allocation9 + $0x310] ss:$24 sps:$4 sm:$0xff]   ;;  %v3388_v26 = vld [vmem:[#allocation9 + $0x2e4] ss:$24 sps:$4 sm:$0xff]  }
 0x176   :  { %1957 = vmatprep.subr.bf16.mxu0 %v3304_v27  ;;  %2000 = vmatprep.subr.bf16.mxu1 %v3307_v28  ;;  %v3391_v27 = vld [vmem:[#allocation9 + $0x5e4] ss:$24 sps:$4 sm:$0xff]   ;;  %v3386_v28 = vld [vmem:[#allocation9 + $0x2e0] ss:$24 sps:$4 sm:$0xff]  }
 0x179   :  { %1958 = vmatpush2.bf16.msra.mxu0 %v3302_v29  ;;  %2001 = vmatpush2.bf16.msra.mxu1 %v3305_v30  ;;  %v3389_v29 = vld [vmem:[#allocation9 + $0x5e0] ss:$24 sps:$4 sm:$0xff]   ;;  %v3394_v30 = vld [vmem:[#allocation9 + $0x2b4] ss:$24 sps:$4 sm:$0xff]  }
 0x17a   :  { %1959 = vmatprep.subr.bf16.mxu0 %v3310_v31  ;;  %2002 = vmatprep.subr.bf16.mxu1 %v3313_v32  ;;  %v3397_v31 = vld [vmem:[#allocation9 + $0x5b4] ss:$24 sps:$4 sm:$0xff]   ;;  %v3392_v32 = vld [vmem:[#allocation9 + $0x2b0] ss:$24 sps:$4 sm:$0xff]  }
 0x17d   :  { %1960 = vmatpush2.bf16.msra.mxu0 %v3308_v33  ;;  %2003 = vmatpush2.bf16.msra.mxu1 %v3311_v34  ;;  %v3395_v33 = vld [vmem:[#allocation9 + $0x5b0] ss:$24 sps:$4 sm:$0xff]   ;;  %v3400_v34 = vld [vmem:[#allocation9 + $0x284] ss:$24 sps:$4 sm:$0xff]  }
 0x17e   :  { %1961 = vmatprep.subr.bf16.mxu0 %v3316_v35  ;;  %2004 = vmatprep.subr.bf16.mxu1 %v3319_v36  ;;  %v3403_v35 = vld [vmem:[#allocation9 + $0x584] ss:$24 sps:$4 sm:$0xff]   ;;  %v3398_v36 = vld [vmem:[#allocation9 + $0x280] ss:$24 sps:$4 sm:$0xff]  }
 0x181   :  { %1962 = vmatpush2.bf16.msra.mxu0 %v3314_v37  ;;  %2005 = vmatpush2.bf16.msra.mxu1 %v3317_v38  ;;  %v3401_v37 = vld [vmem:[#allocation9 + $0x580] ss:$24 sps:$4 sm:$0xff]   ;;  %v3406_v38 = vld [vmem:[#allocation9 + $0x254] ss:$24 sps:$4 sm:$0xff]  }
 0x182   :  { %1963 = vmatprep.subr.bf16.mxu0 %v3322_v39  ;;  %2006 = vmatprep.subr.bf16.mxu1 %v3325_v40  ;;  %v3409_v39 = vld [vmem:[#allocation9 + $0x554] ss:$24 sps:$4 sm:$0xff]   ;;  %v3404_v40 = vld [vmem:[#allocation9 + $0x250] ss:$24 sps:$4 sm:$0xff]  }
 0x185   :  { %1964 = vmatpush2.bf16.msra.mxu0 %v3320_v41  ;;  %2007 = vmatpush2.bf16.msra.mxu1 %v3323_v42  ;;  %v3407_v41 = vld [vmem:[#allocation9 + $0x550] ss:$24 sps:$4 sm:$0xff]   ;;  %v3412_v42 = vld [vmem:[#allocation9 + $0x224] ss:$24 sps:$4 sm:$0xff]  }
 0x186   :  { %1965 = vmatprep.subr.bf16.mxu0 %v3328_v43  ;;  %2008 = vmatprep.subr.bf16.mxu1 %v3331_v46  ;;  %v3415_v43 = vld [vmem:[#allocation9 + $0x524] ss:$24 sps:$4 sm:$0xff]   ;;  %v3410_v46 = vld [vmem:[#allocation9 + $0x220] ss:$24 sps:$4 sm:$0xff]  }
 0x189   :  { %1966 = vmatpush2.bf16.msra.mxu0 %v3326_v47  ;;  %2009 = vmatpush2.bf16.msra.mxu1 %v3329_v50  ;;  %v3413_v47 = vld [vmem:[#allocation9 + $0x520] ss:$24 sps:$4 sm:$0xff]   ;;  %v3418_v50 = vld [vmem:[#allocation9 + $0x1f4] ss:$24 sps:$4 sm:$0xff]  }
 0x18a   :  { %1967 = vmatprep.subr.bf16.mxu0 %v3334_v51  ;;  %2010 = vmatprep.subr.bf16.mxu1 %v3337_v52  ;;  %v3421_v51 = vld [vmem:[#allocation9 + $0x4f4] ss:$24 sps:$4 sm:$0xff]   ;;  %v3416_v52 = vld [vmem:[#allocation9 + $0x1f0] ss:$24 sps:$4 sm:$0xff]  }
 0x18d   :  { %1968 = vmatpush2.bf16.msra.mxu0 %v3332_v53  ;;  %2011 = vmatpush2.bf16.msra.mxu1 %v3335_v54  ;;  %v3419_v53 = vld [vmem:[#allocation9 + $0x4f0] ss:$24 sps:$4 sm:$0xff]   ;;  %v3424_v54 = vld [vmem:[#allocation9 + $0x1c4] ss:$24 sps:$4 sm:$0xff]  }
 0x18e   :  { %2023 = vmatprep.subr.bf16.mxu0 %v3340_v55  ;;  %2066 = vmatprep.subr.bf16.mxu1 %v3343_v56  ;;  %v3427_v55 = vld [vmem:[#allocation9 + $0x4c4] ss:$24 sps:$4 sm:$0xff]   ;;  %v3422_v56 = vld [vmem:[#allocation9 + $0x1c0] ss:$24 sps:$4 sm:$0xff]  }
 0x190   :  { %1970 = vmatmul.mubr.bf16.vlgmr.msra.gmra.mxu0 %v3701_v48  ;;  %2013 = vmatmul.mubr.bf16.vlgmr.msra.gmra.mxu1 %v3703_v49 }
 0x191   :  { %2024 = vmatpush1.bf16.msra.mxu0 %v3338_v57  ;;  %2055 = vmatprep.mubr.bf16.mxu0 %v3697_v44  ;;  %v3359_v44 = vld [vmem:[#allocation9 + $0x3d0] ss:$24 sps:$4 sm:$0xff]   ;;  %v3425_v57 = vld [vmem:[#allocation9 + $0x4c0] ss:$24 sps:$4 sm:$0xff]  }
 0x192   :  { %2067 = vmatpush1.bf16.msra.mxu1 %v3341_v58  ;;  %2098 = vmatprep.mubr.bf16.mxu1 %v3699_v45  ;;  %v3367_v45 = vld [vmem:[#allocation9 + $0x3a4] ss:$24 sps:$4 sm:$0xff]   ;;  %v3430_v58 = vld [vmem:[#allocation9 + $0x194] ss:$24 sps:$4 sm:$0xff]  }
 0x193   :  { %2025 = vmatprep.subr.bf16.mxu0 %v3346_v59  ;;  %2068 = vmatprep.subr.bf16.mxu1 %v3349_v60  ;;  %v3433_v59 = vld [vmem:[#allocation9 + $0x494] ss:$24 sps:$4 sm:$0xff]   ;;  %v3428_v60 = vld [vmem:[#allocation9 + $0x190] ss:$24 sps:$4 sm:$0xff]  }
 0x195   :  { %2026 = vmatpush1.bf16.msra.mxu0 %v3344_v61  ;;  %v3431_v61 = vld [vmem:[#allocation9 + $0x490] ss:$24 sps:$4 sm:$0xff]  }
 0x196   :  { %2069 = vmatpush1.bf16.msra.mxu1 %v3347_v62  ;;  %2027 = vmatprep.subr.bf16.mxu0 %v3352_v63  ;;  %v3434_v62 = vld [vmem:[#allocation11 + $0x78] sm:$0xff]  }
 0x197   :  { %2070 = vmatprep.subr.bf16.mxu1 %v3355_v0  ;;  %v3450_v63 = vld [vmem:[#allocation11 + $0xf8] sm:$0xff]  }
 0x198   :  { %v3435_v0 = vld [vmem:[#allocation11 + $0x38] sm:$0xff]  }
 0x199   :  { %2028 = vmatpush1.bf16.msra.mxu0 %v3350_v1  ;;  %v3436_v1 = vld [vmem:[#allocation11 + $0x70] sm:$0xff]  }
 0x19a   :  { %2071 = vmatpush1.bf16.msra.mxu1 %v3353_v2  ;;  %2029 = vmatprep.subr.bf16.mxu0 %v3358_v3  ;;  %v3451_v2 = vld [vmem:[#allocation11 + $0xb8] sm:$0xff]   ;;  %v3452_v3 = vld [vmem:[#allocation11 + $0xf0] sm:$0xff]  }
 0x19b   :  { %2072 = vmatprep.subr.bf16.mxu1 %v3361_v4  ;;  %v3437_v4 = vld [vmem:[#allocation11 + $0x30] sm:$0xff]  }
 0x19d   :  { %2030 = vmatpush1.bf16.msra.mxu0 %v3356_v5  ;;  %v3438_v5 = vld [vmem:[#allocation11 + $0x68] sm:$0xff]  }
 0x19e   :  { %2073 = vmatpush1.bf16.msra.mxu1 %v3359_v44  ;;  %2031 = vmatprep.subr.bf16.mxu0 %v3364_v6  ;;  %v3453_v44 = vld [vmem:[#allocation11 + $0xb0] sm:$0xff]   ;;  %v3454_v6 = vld [vmem:[#allocation11 + $0xe8] sm:$0xff]  }
 0x19f   :  { %2074 = vmatprep.subr.bf16.mxu1 %v3367_v45  ;;  %v3439_v45 = vld [vmem:[#allocation11 + $0x28] sm:$0xff]  }
 0x1a1   :  { %2032 = vmatpush1.bf16.msra.mxu0 %v3362_v7  ;;  %v3440_v7 = vld [vmem:[#allocation11 + $0x60] sm:$0xff]  }
 0x1a2   :  { %2075 = vmatpush1.bf16.msra.mxu1 %v3365_v8  ;;  %2033 = vmatprep.subr.bf16.mxu0 %v3370_v9  ;;  %v3455_v8 = vld [vmem:[#allocation11 + $0xa8] sm:$0xff]   ;;  %v3456_v9 = vld [vmem:[#allocation11 + $0xe0] sm:$0xff]  }
 0x1a3   :  { %2076 = vmatprep.subr.bf16.mxu1 %v3373_v15  ;;  %v3457_v15 = vld [vmem:[#allocation11 + $0xa0] sm:$0xff]  }
 0x1a5   :  { %2034 = vmatpush1.bf16.msra.mxu0 %v3368_v16  ;;  %v3458_v16 = vld [vmem:[#allocation11 + $0xd8] sm:$0xff]  }
 0x1a6   :  { %2077 = vmatpush1.bf16.msra.mxu1 %v3371_v17  ;;  %2035 = vmatprep.subr.bf16.mxu0 %v3376_v18  ;;  %v3443_v17 = vld [vmem:[#allocation11 + $0x18] sm:$0xff]   ;;  %v3444_v18 = vld [vmem:[#allocation11 + $0x50] sm:$0xff]  }
 0x1a7   :  { %2078 = vmatprep.subr.bf16.mxu1 %v3379_v19  ;;  %v3459_v19 = vld [vmem:[#allocation11 + $0x98] sm:$0xff]  }
 0x1a9   :  { %2036 = vmatpush1.bf16.msra.mxu0 %v3374_v20  ;;  %v3460_v20 = vld [vmem:[#allocation11 + $0xd0] sm:$0xff]  }
 0x1aa   :  { %2079 = vmatpush1.bf16.msra.mxu1 %v3377_v21  ;;  %2037 = vmatprep.subr.bf16.mxu0 %v3382_v22  ;;  %v3445_v21 = vld [vmem:[#allocation11 + $0x10] sm:$0xff]   ;;  %v3446_v22 = vld [vmem:[#allocation11 + $0x48] sm:$0xff]  }
 0x1ab   :  { %2080 = vmatprep.subr.bf16.mxu1 %v3385_v23  ;;  %v3461_v23 = vld [vmem:[#allocation11 + $0x90] sm:$0xff]  }
 0x1ad   :  { %2038 = vmatpush1.bf16.msra.mxu0 %v3380_v24  ;;  %v3462_v24 = vld [vmem:[#allocation11 + $0xc8] sm:$0xff]  }
 0x1ae   :  { %2081 = vmatpush1.bf16.msra.mxu1 %v3383_v25  ;;  %2039 = vmatprep.subr.bf16.mxu0 %v3388_v26  ;;  %v3447_v25 = vld [vmem:[#allocation11 + $0x8] sm:$0xff]   ;;  %v3448_v26 = vld [vmem:[#allocation11 + $0x40] sm:$0xff]  }
 0x1af   :  { %2082 = vmatprep.subr.bf16.mxu1 %v3391_v27  ;;  %v3463_v27 = vld [vmem:[#allocation11 + $0x88] sm:$0xff]  }
 0x1b1   :  { %2040 = vmatpush2.bf16.msra.mxu0 %v3386_v28  ;;  %v3464_v28 = vld [vmem:[#allocation11 + $0xc0] sm:$0xff]  }
 0x1b2   :  { %2083 = vmatpush2.bf16.msra.mxu1 %v3389_v29  ;;  %2041 = vmatprep.subr.bf16.mxu0 %v3394_v30  ;;  %v3449_v29 = vld [vmem:[#allocation11] sm:$0xff]  }
 0x1b3   :  { %2084 = vmatprep.subr.bf16.mxu1 %v3397_v31  ;;  %v3465_v30 = vld [vmem:[#allocation11 + $0x80] sm:$0xff]   ;;  %v3466_v31 = vld [vmem:[#allocation11 + $0x178] sm:$0xff]  }
 0x1b5   :  { %2042 = vmatpush2.bf16.msra.mxu0 %v3392_v32  ;;  %v3720_v32 = vld [vmem:[%s3751_s4] sm:$0x3f] }
 0x1b6   :  { %2085 = vmatpush2.bf16.msra.mxu1 %v3395_v33  ;;  %2043 = vmatprep.subr.bf16.mxu0 %v3400_v34  ;;  %v868_v33 = vrot.slane %v3720_v32, %v633_v11  ;;  %v864_v34 = vrot.slane %v3720_v32, %v629_v13 }
 0x1b7   :  { %2086 = vmatprep.subr.bf16.mxu1 %v3403_v35 }
 0x1b9   :  { %2044 = vmatpush2.bf16.msra.mxu0 %v3398_v36 }
 0x1ba   :  { %2087 = vmatpush2.bf16.msra.mxu1 %v3401_v37  ;;  %2045 = vmatprep.subr.bf16.mxu0 %v3406_v38 }
 0x1bb   :  { %2088 = vmatprep.subr.bf16.mxu1 %v3409_v39 }
 0x1bd   :  { %2046 = vmatpush2.bf16.msra.mxu0 %v3404_v40 }
 0x1be   :  { %2089 = vmatpush2.bf16.msra.mxu1 %v3407_v41  ;;  %2047 = vmatprep.subr.bf16.mxu0 %v3412_v42 }
 0x1bf   :  { %2090 = vmatprep.subr.bf16.mxu1 %v3415_v43 }
 0x1c1   :  { %2048 = vmatpush2.bf16.msra.mxu0 %v3410_v46 }
 0x1c2   :  { %2091 = vmatpush2.bf16.msra.mxu1 %v3413_v47  ;;  %2049 = vmatprep.subr.bf16.mxu0 %v3418_v50 }
 0x1c3   :  { %2092 = vmatprep.subr.bf16.mxu1 %v3421_v51 }
 0x1c5   :  { %2050 = vmatpush2.bf16.msra.mxu0 %v3416_v52 }
 0x1c6   :  { %2093 = vmatpush2.bf16.msra.mxu1 %v3419_v53  ;;  %2051 = vmatprep.subr.bf16.mxu0 %v3424_v54 }
 0x1c7   :  { %2094 = vmatprep.subr.bf16.mxu1 %v3427_v55 }
 0x1c9   :  { %2052 = vmatpush2.bf16.msra.mxu0 %v3422_v56 }
 0x1ca   :  { %2095 = vmatpush2.bf16.msra.mxu1 %v3425_v57  ;;  %2053 = vmatprep.subr.bf16.mxu0 %v3430_v58  ;;  %v3467_v58 = vld [vmem:[#allocation11 + $0x138] sm:$0xff]  }
 0x1cb   :  { %2096 = vmatprep.subr.bf16.mxu1 %v3433_v59 }
 0x1cd   :  { %2054 = vmatpush2.bf16.msra.mxu0 %v3428_v60  ;;  %v3468_v60 = vld [vmem:[#allocation11 + $0x170] sm:$0xff]  }
 0x1ce   :  { %2097 = vmatpush2.bf16.msra.mxu1 %v3431_v61  ;;  %2969 = vmatprep.subr.bf16.mxu0 %v3434_v62  ;;  %v3469_v61 = vld [vmem:[#allocation11 + $0x130] sm:$0xff]   ;;  %v3470_v62 = vld [vmem:[#allocation11 + $0x168] sm:$0xff]  }
 0x1cf   :  { %2991 = vmatprep.subr.bf16.mxu1 %v3450_v63  ;;  %v3471_v63 = vld [vmem:[#allocation11 + $0x128] sm:$0xff]  }
 0x1d0   :  { %2056 = vmatmul.mubr.bf16.vlgmr.msra.gmra.mxu0 %v3701_v48  ;;  %v3441_v48 = vld [vmem:[#allocation11 + $0x20] sm:$0xff]  }
 0x1d1   :  { %2099 = vmatmul.mubr.bf16.vlgmr.msra.gmra.mxu1 %v3703_v49  ;;  %2970 = vmatpush3.bf16.msra.mxu0 %v3435_v0  ;;  %v3442_v49 = vld [vmem:[#allocation11 + $0x58] sm:$0xff]   ;;  %v3472_v0 = vld [vmem:[#allocation11 + $0x160] sm:$0xff]  }
 0x1d2   :  { %2971 = vmatprep.subr.bf16.mxu0 %v3436_v1  ;;  %2992 = vmatpush3.bf16.msra.mxu1 %v3451_v2  ;;  %v3473_v1 = vld [vmem:[#allocation11 + $0x120] sm:$0xff]   ;;  %v3474_v2 = vld [vmem:[#allocation11 + $0x158] sm:$0xff]  }
 0x1d3   :  { %2993 = vmatprep.subr.bf16.mxu1 %v3452_v3  ;;  %v3475_v3 = vld [vmem:[#allocation11 + $0x118] sm:$0xff]  }
 0x1d5   :  { %2972 = vmatpush3.bf16.msra.mxu0 %v3437_v4  ;;  %v3476_v4 = vld [vmem:[#allocation11 + $0x150] sm:$0xff]  }
 0x1d6   :  { %2973 = vmatprep.subr.bf16.mxu0 %v3438_v5  ;;  %2994 = vmatpush3.bf16.msra.mxu1 %v3453_v44  ;;  %v3477_v5 = vld [vmem:[#allocation11 + $0x110] sm:$0xff]   ;;  %v3478_v44 = vld [vmem:[#allocation11 + $0x148] sm:$0xff]  }
 0x1d7   :  { %2995 = vmatprep.subr.bf16.mxu1 %v3454_v6  ;;  %v3479_v6 = vld [vmem:[#allocation11 + $0x108] sm:$0xff]  }
 0x1d9   :  { %2974 = vmatpush3.bf16.msra.mxu0 %v3439_v45  ;;  %v3480_v45 = vld [vmem:[#allocation11 + $0x140] sm:$0xff]  }
 0x1da   :  { %2975 = vmatprep.subr.bf16.mxu0 %v3440_v7  ;;  %2996 = vmatpush3.bf16.msra.mxu1 %v3455_v8  ;;  %v3481_v7 = vld [vmem:[#allocation11 + $0x100] sm:$0xff]   ;;  %v876_v8 = vrot.slane %v3720_v32, %v641_v12 }
 0x1db   :  { %2997 = vmatprep.subr.bf16.mxu1 %v3456_v9  ;;  %v872_v9 = vrot.slane %v3720_v32, %v637_v14 }
 0x1dd   :  { %2976 = vmatpush3.bf16.msra.mxu0 %v3441_v48 }
 0x1de   :  { %2977 = vmatprep.subr.bf16.mxu0 %v3442_v49  ;;  %2998 = vmatpush3.bf16.msra.mxu1 %v3457_v15 }
 0x1df   :  { %2999 = vmatprep.subr.bf16.mxu1 %v3458_v16 }
 0x1e1   :  { %2978 = vmatpush3.bf16.msra.mxu0 %v3443_v17 }
 0x1e2   :  { %2979 = vmatprep.subr.bf16.mxu0 %v3444_v18  ;;  %3000 = vmatpush3.bf16.msra.mxu1 %v3459_v19 }
 0x1e3   :  { %3001 = vmatprep.subr.bf16.mxu1 %v3460_v20 }
 0x1e5   :  { %2980 = vmatpush3.bf16.msra.mxu0 %v3445_v21 }
 0x1e6   :  { %2981 = vmatprep.subr.bf16.mxu0 %v3446_v22  ;;  %3002 = vmatpush3.bf16.msra.mxu1 %v3461_v23 }
 0x1e7   :  { %3003 = vmatprep.subr.bf16.mxu1 %v3462_v24 }
 0x1e9   :  { %2982 = vmatpush3.bf16.msra.mxu0 %v3447_v25 }
 0x1ea   :  { %2983 = vmatprep.subr.bf16.mxu0 %v3448_v26  ;;  %3004 = vmatpush3.bf16.msra.mxu1 %v3463_v27 }
 0x1eb   :  { %3005 = vmatprep.subr.bf16.mxu1 %v3464_v28 }
 0x1ed   :  { %2984 = vmatpush3.bf16.msra.mxu0 %v3449_v29 }
 0x1ee   :  { %3006 = vmatpush3.bf16.msra.mxu1 %v3465_v30  ;;  %3013 = vmatprep.subr.bf16.mxu0 %v3466_v31 }
 0x210   :  { %v1885_v35 = vpop.f32.mrf.mxu0  ;;  %v1928_v36 = vpop.f32.mrf.mxu1 }
 0x211   :  { %v1886_v40 = vadd.f32 %v1885_v35, %v864_v34  ;;  %v879_v35 = vsub.s32 4, %v3683_v10 }
 0x212   :  { %v1887_v37 = vpop.f32.mrf.mxu0  ;;  %v1930_v38 = vpop.f32.mrf.mxu1 }
 0x213   :  { %v1888_v39 = vadd.f32 %v1887_v37, %v868_v33  ;;  %v1929_v52 = vadd.f32 %v1928_v36, %v1886_v40  ;;  %v880_v37 = vrot.slane %v3720_v32, %v879_v35 }
 0x214   :  { %v1889_v41 = vpop.f32.mrf.mxu0  ;;  %v1932_v42 = vpop.f32.mrf.mxu1 }
 0x215   :  { %v1890_v43 = vadd.f32 %v1889_v41, %v864_v34  ;;  %v1931_v47 = vadd.f32 %v1930_v38, %v1888_v39  ;;  %v2109_v13 = vmax.f32 %v1929_v52, 0.0  ;;  %v883_v34 = vsub.s32 5, %v3683_v10 }
 0x216   :  { %v1891_v46 = vpop.f32.mrf.mxu0  ;;  %v1934_v53 = vpop.f32.mrf.mxu1 }
 0x217   :  { %v1933_v50 = vadd.f32 %v1932_v42, %v1890_v43  ;;  %v1892_v51 = vadd.f32 %v1891_v46, %v868_v33  ;;  %v2110_v55 = vmax.f32 %v1931_v47, 0.0  ;;  %v884_v36 = vrot.slane %v3720_v32, %v883_v34 }
 0x219   :  { %v1935_v11 = vadd.f32 %v1934_v53, %v1892_v51  ;;  %v2115_v54 = vmax.f32 %v1933_v50, 0.0 }
 0x21b   :  { %v2116_v56 = vmax.f32 %v1935_v11, 0.0  ;;  %v2121_v59 = vpack.c.bf16 %v2115_v54, %v2109_v13 }
 0x21d   :  { %v2122_v57 = vpack.c.bf16 %v2116_v56, %v2110_v55 }
 0x21f   :  { %2550 = vmatprep.mubr.bf16.mxu0 %v2122_v57 }
 0x220   :  { %2551 = vmatmul.mubr.bf16.vlgmr.msra.gmra.mxu0 %v2121_v59 }
 0x221   :  { %3014 = vmatpush3.bf16.msra.mxu0 %v3467_v58 }
 0x222   :  { %3015 = vmatprep.subr.bf16.mxu0 %v3468_v60 }
 0x225   :  { %3016 = vmatpush3.bf16.msra.mxu0 %v3469_v61 }
 0x226   :  { %3017 = vmatprep.subr.bf16.mxu0 %v3470_v62 }
 0x229   :  { %3018 = vmatpush3.bf16.msra.mxu0 %v3471_v63 }
 0x22a   :  { %3019 = vmatprep.subr.bf16.mxu0 %v3472_v0 }
 0x22d   :  { %3020 = vmatpush3.bf16.msra.mxu0 %v3473_v1 }
 0x22e   :  { %3021 = vmatprep.subr.bf16.mxu0 %v3474_v2 }
 0x231   :  { %3022 = vmatpush3.bf16.msra.mxu0 %v3475_v3  ;;  %v2920_v3 = vld [vmem:[%s3753_s6] ss:$0 sm:$0xff]  ;;  %s3582_s6 = scalar_lea.vmem %s2649_s10, 256 }
 0x232   :  { %3023 = vmatprep.subr.bf16.mxu0 %v3476_v4  ;;  %p3583_p11 = scmp.ne.s32.totalorder %s2649_s10, %s3582_s6  ;;  %p3588_p13 = scmp.lt.s32.totalorder %s3582_s6, %s3582_s6 }
 0x234   :  { %p3589_p0 = por %p3588_p13, %p3587_p12 }
 0x235   :  { %3024 = vmatpush3.bf16.msra.mxu0 %v3477_v5 }
 0x236   :  { %3025 = vmatprep.subr.bf16.mxu0 %v3478_v44  ;;  %p3590_p1 = pnand %p3589_p0, %p3583_p11 }
 0x239   :  { %3026 = vmatpush3.bf16.msra.mxu0 %v3479_v6 }
 0x23a   :  { %3027 = vmatprep.subr.bf16.mxu0 %v3480_v45 }
 0x23d   :  { %3028 = vmatpush3.bf16.msra.mxu0 %v3481_v7 }
 0x250   :  { %v1971_v48 = vpop.f32.mrf.mxu0  ;;  %v2014_v49 = vpop.f32.mrf.mxu1 }
 0x251   :  { %v1972_v18 = vadd.f32 %v1971_v48, %v872_v9 }
 0x252   :  { %v1973_v15 = vpop.f32.mrf.mxu0  ;;  %v2016_v16 = vpop.f32.mrf.mxu1 }
 0x253   :  { %v1974_v17 = vadd.f32 %v1973_v15, %v876_v8  ;;  %v2015_v26 = vadd.f32 %v2014_v49, %v1972_v18 }
 0x254   :  { %v1975_v19 = vpop.f32.mrf.mxu0  ;;  %v2018_v20 = vpop.f32.mrf.mxu1 }
 0x255   :  { %v1976_v21 = vadd.f32 %v1975_v19, %v872_v9  ;;  %v2017_v23 = vadd.f32 %v2016_v16, %v1974_v17  ;;  %v2111_v14 = vmax.f32 %v2015_v26, 0.0 }
 0x256   :  { %v1977_v22 = vpop.f32.mrf.mxu0  ;;  %v2020_v27 = vpop.f32.mrf.mxu1 }
 0x257   :  { %v2019_v24 = vadd.f32 %v2018_v20, %v1976_v21  ;;  %v1978_v25 = vadd.f32 %v1977_v22, %v876_v8  ;;  %v2112_v29 = vmax.f32 %v2017_v23, 0.0 }
 0x259   :  { %v2021_v12 = vadd.f32 %v2020_v27, %v1978_v25  ;;  %v2117_v28 = vmax.f32 %v2019_v24, 0.0 }
 0x25b   :  { %v2118_v30 = vmax.f32 %v2021_v12, 0.0  ;;  %v2123_v33 = vpack.c.bf16 %v2117_v28, %v2111_v14 }
 0x25d   :  { %v2124_v31 = vpack.c.bf16 %v2118_v30, %v2112_v29 }
 0x25f   :  { %2591 = vmatprep.mubr.bf16.mxu1 %v2124_v31 }
 0x260   :  { %2592 = vmatmul.mubr.bf16.vlgmr.msra.gmra.mxu1 %v2123_v33 }
 0x290   :  { %v2057_v38 = vpop.f32.mrf.mxu0 }
 0x291   :  { %v2100_v39 = vpop.f32.mrf.mxu1  ;;  %v2058_v43 = vadd.f32 %v2057_v38, %v880_v37 }
 0x292   :  { %v2059_v40 = vpop.f32.mrf.mxu0 }
 0x293   :  { %v2060_v41 = vadd.f32 %v2059_v40, %v884_v36  ;;  %v2102_v42 = vpop.f32.mrf.mxu1  ;;  %v2101_v54 = vadd.f32 %v2100_v39, %v2058_v43 }
 0x294   :  { %v2061_v46 = vpop.f32.mrf.mxu0 }
 0x295   :  { %v2062_v47 = vadd.f32 %v2061_v46, %v880_v37  ;;  %v2104_v50 = vpop.f32.mrf.mxu1  ;;  %v2103_v52 = vadd.f32 %v2102_v42, %v2060_v41  ;;  %v2113_v32 = vmax.f32 %v2101_v54, 0.0 }
 0x296   :  { %v2063_v51 = vpop.f32.mrf.mxu0 }
 0x297   :  { %v2105_v53 = vadd.f32 %v2104_v50, %v2062_v47  ;;  %v2064_v11 = vadd.f32 %v2063_v51, %v884_v36  ;;  %v2106_v55 = vpop.f32.mrf.mxu1  ;;  %v2114_v13 = vmax.f32 %v2103_v52, 0.0 }
 0x299   :  { %v2107_v10 = vadd.f32 %v2106_v55, %v2064_v11  ;;  %v2119_v56 = vmax.f32 %v2105_v53, 0.0 }
 0x29b   :  { %v2120_v57 = vmax.f32 %v2107_v10, 0.0  ;;  %v2125_v59 = vpack.c.bf16 %v2119_v56, %v2113_v32 }
 0x29d   :  { %v2126_v58 = vpack.c.bf16 %v2120_v57, %v2114_v13 }
 0x29f   :  { %2632 = vmatprep.mubr.bf16.mxu0 %v2126_v58 }
 0x2a0   :  { %2633 = vmatmul.mubr.bf16.vlgmr.msra.gmra.mxu0 %v2125_v59 }
 0x2e0   :  { %v2985_v60 = vpop.f32.mrf.mxu0 }
 0x2e2   :  { %v2986_v62 = vpop.f32.mrf.mxu0 }
 0x2e3   :  { %v2987_v2 = vadd.f32 %v2986_v62, %v2985_v60 }
 0x2e4   :  { %v2988_v0 = vpop.f32.mrf.mxu0 }
 0x2e5   :  { %v2553_v45 = vadd.f32 %v2987_v2, %v2920_v3 }
 0x2e6   :  { %v2989_v4 = vpop.f32.mrf.mxu0 }
 0x2e7   :  { %v2990_v7 = vadd.f32 %v2989_v4, %v2988_v0 }
 0x2e9   :  { %v2556_v16 = vadd.f32 %v2990_v7, %v2920_v3 }
 0x320   :  { %v3007_v61 = vpop.f32.mrf.mxu1 }
 0x322   :  { %v3008_v63 = vpop.f32.mrf.mxu1 }
 0x323   :  { %v3009_v5 = vadd.f32 %v3008_v63, %v3007_v61 }
 0x324   :  { %v3010_v1 = vpop.f32.mrf.mxu1 }
 0x325   :  { %v2594_v9 = vadd.f32 %v3009_v5, %v2553_v45 }
 0x326   :  { %v3011_v44 = vpop.f32.mrf.mxu1 }
 0x327   :  { %v3012_v48 = vadd.f32 %v3011_v44, %v3010_v1 }
 0x329   :  { %v2597_v19 = vadd.f32 %v3012_v48, %v2556_v16 }
 0x360   :  { %v3029_v6 = vpop.f32.mrf.mxu0 }
 0x362   :  { %v3030_v8 = vpop.f32.mrf.mxu0 }
 0x363   :  { %v3031_v49 = vadd.f32 %v3030_v8, %v3029_v6 }
 0x364   :  { %v3032_v15 = vpop.f32.mrf.mxu0 }
 0x365   :  { %v2635_v17 = vadd.f32 %v3031_v49, %v2594_v9 }
 0x366   :  { %v3033_v18 = vpop.f32.mrf.mxu0 }
 0x367   :  { %2641 = vst [vmem:[#allocation12] sm:$0xff] %v2635_v17  ;;  %v3034_v20 = vadd.f32 %v3033_v18, %v3032_v15 }
 0x369   :  { %v2638_v21 = vadd.f32 %v3034_v20, %v2597_v19 }
 0x36b   :  { %2642 = vst [vmem:[#allocation12 + $0x8] sm:$0xff] %v2638_v21 }
 0x36c   :  { %3593 = shalt.err (!%p3590_p1)
}
 0x36d   :  { %2654 = dma.vmem_to_hbm [thread:$0]  %s2649_s10, 256, %s3754_s7, [#allocation5], %s3617_s17, %s3617_s17, %s3618_s18  }
 0x36e   :  { %3608 = dma.done.wait [#allocation5], 256  }
 0x36f   :  { %3609 = vsyncadd [#allocation5], 4294967040 }
 0x370   :  { %2658 = vsyncpa [#allocation4], 1 }
 0x371   :  { %2659 = vsyncpa [#allocation7], 1 }
 0x372   :  { %2660 = vsyncpa [#allocation10], 1 }
 0x373   :  { %2661 = vsyncpa [#allocation5], 1 }

</bundles_post_ra>
